<compile_context>
chip_gen: v5e
topology: v5e:2x2
jax: 0.10.0
libtpu: 0.0.40
codegen_flags: <defaults>
</compile_context>

<pallas_src>
import functools

import jax
import jax.numpy as jnp
from jax import lax
from jax.experimental import pallas as pl
from jax.experimental.pallas import tpu as pltpu


# ---------------------------------------------------------------------------
# Shared kernel pieces.
# ---------------------------------------------------------------------------
def _accumulate_pool(x_ref, acc_ref):
    """Accumulate the sequence-sum of this (tb, tl, H) tile into the f32 scratch."""
    l = pl.program_id(1)

    @pl.when(l == 0)
    def _():
        acc_ref[...] = jnp.zeros_like(acc_ref)

    # f32 accumulation regardless of the streamed dtype (bf16 or f32).
    acc_ref[...] += jnp.sum(x_ref[...].astype(jnp.float32), axis=1)
    return l == pl.num_programs(1) - 1


def _project(acc_ref, w_ref, b_ref, inv_l):
    """mean over L (scale by inv_l), then fc: [tb, H] @ [H, E] + b -> [tb, E] f32."""
    pooled = acc_ref[...] * inv_l
    w = w_ref[...]
    # Feed the MXU in the weight's native dtype (no f32 upcast copy); accumulate f32.
    y = jnp.dot(pooled.astype(w.dtype), w, preferred_element_type=jnp.float32)
    return y + b_ref[...].astype(jnp.float32)


def _bn_l2(p, gamma, beta):
    """BatchNorm1d (training-mode batch stats) + F.normalize(dim=1). p: [B, E] f32."""
    mu = jnp.mean(p, axis=0, keepdims=True)
    d = p - mu
    var = jnp.mean(d * d, axis=0, keepdims=True)          # biased batch variance
    bn = d * lax.rsqrt(var + 1e-5) * gamma + beta
    # F.normalize(dim=1, eps=1e-12): x / max(||x||, eps) == x * rsqrt(max(sumsq, eps^2))
    sumsq = jnp.sum(bn * bn, axis=1, keepdims=True)
    return bn * lax.rsqrt(jnp.maximum(sumsq, 1e-24))


# ---------------------------------------------------------------------------
# Kernel 1a: mean-pool over L + FC projection (unfused epilogue).
# Grid: (B/tb, L/tl); B "parallel", L "arbitrary" reduction w/ VMEM accumulator.
# ---------------------------------------------------------------------------
def pool_fc_kernel(x_ref, w_ref, b_ref, o_ref, acc_ref, *, inv_l):
    is_last = _accumulate_pool(x_ref, acc_ref)

    @pl.when(is_last)
    def _():
        o_ref[...] = _project(acc_ref, w_ref, b_ref, inv_l).astype(o_ref.dtype)


# ---------------------------------------------------------------------------
# Kernel 1b: same, but with BatchNorm + L2 normalize fused into the epilogue.
# Only valid when the batch tile covers the whole batch (nb == 1).
# ---------------------------------------------------------------------------
def pool_fc_bn_l2_kernel(x_ref, w_ref, b_ref, g_ref, beta_ref, o_ref, acc_ref, *, inv_l):
    is_last = _accumulate_pool(x_ref, acc_ref)

    @pl.when(is_last)
    def _():
        y = _project(acc_ref, w_ref, b_ref, inv_l)                       # [B, E] f32
        out = _bn_l2(y, g_ref[...].astype(jnp.float32),
                     beta_ref[...].astype(jnp.float32))
        o_ref[...] = out.astype(o_ref.dtype)


# ---------------------------------------------------------------------------
# Kernel 2 (only when the batch is tiled): BatchNorm1d + F.normalize over [B, E].
# ---------------------------------------------------------------------------
def bn_l2_kernel(p_ref, gamma_ref, beta_ref, o_ref):
    p = p_ref[...].astype(jnp.float32)
    out = _bn_l2(p, gamma_ref[...].astype(jnp.float32),
                 beta_ref[...].astype(jnp.float32))
    o_ref[...] = out.astype(o_ref.dtype)


# ---------------------------------------------------------------------------
# VMEM-aware tile selection.
# ---------------------------------------------------------------------------
def _vmem_capacity_bytes():
    try:
        cap = int(pltpu.get_tpu_info().vmem_capacity_bytes)
        if cap > 0:
            return cap
    except Exception:
        pass
    return 64 << 20  # conservative fallback: v7x per-TensorCore VMEM


def _candidate_tiles(n, quantum):
    """Divisors of n that are multiples of quantum, descending; or [n] if none."""
    if n % quantum != 0:
        return [n]
    cands = [t for t in range(n, 0, -quantum) if n % t == 0]
    return cands or [n]


def _divisor_tile(n, pref, quantum):
    """Largest multiple of quantum <= pref that divides n, else the full dim."""
    if n % quantum != 0:
        return n
    t = (min(pref, n) // quantum) * quantum
    while t >= quantum:
        if n % t == 0:
            return t
        t -= quantum
    return n


def _select_tiles(B, L, H, E, x_itemsize, w_itemsize, vmem_cap, max_tb=None):
    quantum_l = 16 if x_itemsize < 4 else 8          # bf16 sublane packing
    usable = int(0.70 * vmem_cap)                    # headroom under vmem_limit_bytes

    tb_pref = 256 if max_tb is None else max_tb      # keep tb modest; spend VMEM on tl
    tb = _divisor_tile(B, tb_pref, 8)

    def need(tb_, tl_):
        x_blk = 2 * tb_ * tl_ * H * x_itemsize       # double-buffered x stream
        consts = 2 * (H * E + 4 * E) * w_itemsize    # worst case: double-buffered consts
        acc = tb_ * H * 4
        out = 2 * tb_ * E * 4
        return x_blk + consts + acc + out

    tl_cands = _candidate_tiles(L, quantum_l)
    tl = tl_cands[-1]
    for t in tl_cands:                               # largest tl that fits the budget
        if need(tb, t) <= usable:
            tl = t
            break

    while need(tb, tl) > usable and tb > 8:          # last resort: shrink tb
        new_tb = _divisor_tile(B, tb // 2, 8)
        if new_tb == tb:
            break
        tb = new_tb

    return tb, tl


# ---------------------------------------------------------------------------
# Host-side wrapper.
# ---------------------------------------------------------------------------
def text_encoder_forward(hidden, w_fc, b_fc, gamma, beta, *, max_tb=None):
    """hidden: [B, L, H] backbone last_hidden_state (f32 or bf16); returns [B, E] f32."""
    B, L, H = hidden.shape
    E = w_fc.shape[1]

    vmem_cap = _vmem_capacity_bytes()
    tb, tl = _select_tiles(B, L, H, E, hidden.dtype.itemsize, w_fc.dtype.itemsize,
                           vmem_cap, max_tb=max_tb)
    nb, nl = B // tb, L // tl
    fuse = (nb == 1)                                 # whole batch in one tile -> fuse BN+L2
    vmem_limit = int(0.80 * vmem_cap)                # ~100 MiB v5e/v6e, ~51 MiB v7x

    cost = pl.CostEstimate(
        flops=2 * B * H * E,
        transcendentals=0,
        bytes_accessed=B * L * H * hidden.dtype.itemsize
        + H * E * w_fc.dtype.itemsize + B * E * 4)

    def run(single_buffer_consts):
        const_kw = {"pipeline_mode": pl.Buffered(1)} if single_buffer_consts else {}
        x_spec = pl.BlockSpec((tb, tl, H), lambda i, l: (i, l, 0))
        w_spec = pl.BlockSpec((H, E), lambda i, l: (0, 0), **const_kw)
        b_spec = pl.BlockSpec((1, E), lambda i, l: (0, 0), **const_kw)
        g_spec = pl.BlockSpec((1, E), lambda i, l: (0, 0), **const_kw)
        be_spec = pl.BlockSpec((1, E), lambda i, l: (0, 0), **const_kw)

        if fuse:
            kernel = functools.partial(pool_fc_bn_l2_kernel, inv_l=1.0 / L)
            in_specs = [x_spec, w_spec, b_spec, g_spec, be_spec]
            args = (hidden, w_fc, b_fc, gamma, beta)
        else:
            kernel = functools.partial(pool_fc_kernel, inv_l=1.0 / L)
            in_specs = [x_spec, w_spec, b_spec]
            args = (hidden, w_fc, b_fc)

        pooled = pl.pallas_call(
            kernel,
            out_shape=jax.ShapeDtypeStruct((B, E), jnp.float32),
            grid_spec=pltpu.PrefetchScalarGridSpec(
                num_scalar_prefetch=0,
                grid=(nb, nl),
                in_specs=in_specs,
                out_specs=pl.BlockSpec((tb, E), lambda i, l: (i, 0)),
                scratch_shapes=[pltpu.VMEM((tb, H), jnp.float32)],
            ),
            compiler_params=pltpu.CompilerParams(
                dimension_semantics=("parallel", "arbitrary"),
                vmem_limit_bytes=vmem_limit),
            cost_estimate=cost,
        )(*args)

        if fuse:
            return pooled

        # Batch was tiled: BN + L2 need full-batch statistics -> tiny second call.
        return pl.pallas_call(
            bn_l2_kernel,
            out_shape=jax.ShapeDtypeStruct((B, E), jnp.float32),
            grid_spec=pl.GridSpec(
                grid=(1,),
                in_specs=[
                    pl.BlockSpec((B, E), lambda i: (0, 0)),
                    pl.BlockSpec((1, E), lambda i: (0, 0)),
                    pl.BlockSpec((1, E), lambda i: (0, 0)),
                ],
                out_specs=pl.BlockSpec((B, E), lambda i: (0, 0)),
            ),
            compiler_params=pltpu.CompilerParams(
                dimension_semantics=("arbitrary",)),
        )(pooled, gamma, beta)

    try:
        return run(single_buffer_consts=True)
    except Exception:
        # pipeline_mode=pl.Buffered(1) not accepted on this jax/mosaic build;
        # fall back to default double-buffered constant blocks.
        return run(single_buffer_consts=False)


# ---------------------------------------------------------------------------
# Pure-JAX reference matching the original (pre-commuted) PyTorch math.
# ---------------------------------------------------------------------------
def reference_forward(hidden, w, b, gamma, beta):
    y = jnp.einsum("blh,he->ble", hidden.astype(jnp.float32), w) + b[None]
    pooled = jnp.mean(y, axis=1)
    mu = jnp.mean(pooled, axis=0, keepdims=True)
    var = jnp.mean((pooled - mu) ** 2, axis=0, keepdims=True)
    bn = (pooled - mu) / jnp.sqrt(var + 1e-5) * gamma + beta
    nrm = jnp.sqrt(jnp.sum(bn * bn, axis=1, keepdims=True))
    return bn / jnp.maximum(nrm, 1e-12)


if __name__ == "__main__":
    # Small, tile-friendly shapes consistent with the module's forward.
    B = 16       # batch
    L = 32       # max_seq_length (pool kernel_size == L)
    H = 128      # backbone hidden_size
    E = 256      # embed_size
    VOCAB = 64

    key = jax.random.PRNGKey(0)
    k_emb, k_ids, k_w, k_b, k_g, k_beta = jax.random.split(key, 6)

    # Synthetic deterministic "backbone": embedding lookup (plain-JAX glue).
    emb_table = jax.random.normal(k_emb, (VOCAB, H), jnp.float32) * 0.1
    input_ids = jax.random.randint(k_ids, (B, L), 0, VOCAB)
    attention_mask = jnp.ones((B, L), jnp.int32)   # consumed only by the (stand-in) backbone
    # Stream the activations in bf16 (halves the dominant HBM read traffic);
    # accumulation inside the kernel is f32.
    hidden = emb_table[input_ids].astype(jnp.bfloat16)          # [B, L, H]

    # fc params: PyTorch weight is [E, H]; stored transposed [H, E] for the kernel.
    w_fc = jax.random.normal(k_w, (H, E), jnp.float32) * (1.0 / jnp.sqrt(H))
    b_fc = jax.random.normal(k_b, (1, E), jnp.float32) * 0.01
    # BatchNorm1d affine params.
    gamma = 1.0 + 0.1 * jax.random.normal(k_g, (1, E), jnp.float32)
    beta = 0.1 * jax.random.normal(k_beta, (1, E), jnp.float32)

    ref = reference_forward(hidden, w_fc, b_fc, gamma, beta)

    # Path 1: whole batch fits one tile -> fused pool+fc+BN+L2 single kernel.
    out_fused = text_encoder_forward(hidden, w_fc, b_fc, gamma, beta)
    out_fused = jax.block_until_ready(out_fused)
    assert out_fused.shape == (B, E)
    assert jnp.allclose(out_fused, ref, atol=1e-4, rtol=1e-4), "fused path mismatch"

    # Path 2: force batch tiling (nb > 1) -> pool+fc kernel + separate BN+L2 kernel.
    out_tiled = text_encoder_forward(hidden, w_fc, b_fc, gamma, beta, max_tb=8)
    out_tiled = jax.block_until_ready(out_tiled)
    assert out_tiled.shape == (B, E)
    assert jnp.allclose(out_tiled, ref, atol=1e-4, rtol=1e-4), "tiled path mismatch"

    print("KERNEL_OK")
</pallas_src>

<mosaic_0001>
module attributes {stable_mosaic.version = 11 : i64} {
  func.func @pool_fc_bn_l2_kernel(%arg0: i32, %arg1: i32, %arg2: memref<16x32x128xbf16, #tpu.memory_space<vmem>>, %arg3: memref<128x256xf32, #tpu.memory_space<vmem>>, %arg4: memref<1x256xf32, #tpu.memory_space<vmem>>, %arg5: memref<1x256xf32, #tpu.memory_space<vmem>>, %arg6: memref<1x256xf32, #tpu.memory_space<vmem>>, %arg7: memref<16x256xf32, #tpu.memory_space<vmem>>, %arg8: memref<16x128xf32, #tpu.memory_space<vmem>>) attributes {dimension_semantics = [#tpu.dimension_semantics<parallel>, #tpu.dimension_semantics<arbitrary>], iteration_bounds = array<i64: 1, 1>, scalar_prefetch = 0 : i64, scratch_operands = 1 : i64, tpu.core_type = #tpu.core_type<tc>, window_params = [{transform_indices = @transform_0, window_bounds = array<i64: 16, 32, 128>}, {pipeline_mode = #tpu.pipeline_mode<synchronous>, transform_indices = @transform_1, window_bounds = array<i64: 128, 256>}, {pipeline_mode = #tpu.pipeline_mode<synchronous>, transform_indices = @transform_2, window_bounds = array<i64: 1, 256>}, {pipeline_mode = #tpu.pipeline_mode<synchronous>, transform_indices = @transform_3, window_bounds = array<i64: 1, 256>}, {pipeline_mode = #tpu.pipeline_mode<synchronous>, transform_indices = @transform_4, window_bounds = array<i64: 1, 256>}, {transform_indices = @transform_5, window_bounds = array<i64: 16, 256>}]} {
    %c0_i32 = arith.constant 0 : i32
    %0 = arith.cmpi eq, %arg1, %c0_i32 : i32
    %1 = arith.extui %0 : i1 to i32
    %c0_i32_0 = arith.constant 0 : i32
    %2 = arith.cmpi ne, %1, %c0_i32_0 : i32
    scf.if %2 {
      %cst_9 = arith.constant 0.000000e+00 : f32
      %12 = vector.broadcast %cst_9 : f32 to vector<16x128xf32>
      %c0_10 = arith.constant 0 : index
      %c0_11 = arith.constant 0 : index
      %13 = vector.load %arg8[%c0_10, %c0_11] : memref<16x128xf32, #tpu.memory_space<vmem>>, vector<16x128xf32>
      tpu.vector_store %arg8[%c0_10, %c0_11], %12 {strides = array<i32>} : memref<16x128xf32, #tpu.memory_space<vmem>>, vector<16x128xf32>,
    } else {
    }
    %c0 = arith.constant 0 : index
    %c0_1 = arith.constant 0 : index
    %3 = vector.load %arg8[%c0, %c0_1] : memref<16x128xf32, #tpu.memory_space<vmem>>, vector<16x128xf32>
    %c0_2 = arith.constant 0 : index
    %c0_3 = arith.constant 0 : index
    %c0_4 = arith.constant 0 : index
    %4 = vector.load %arg2[%c0_2, %c0_3, %c0_4] : memref<16x32x128xbf16, #tpu.memory_space<vmem>>, vector<16x32x128xbf16>
    %5 = arith.extf %4 : vector<16x32x128xbf16> to vector<16x32x128xf32>
    %cst = arith.constant dense<0.000000e+00> : vector<16x128xf32>
    %6 = vector.multi_reduction <add>, %5, %cst [1] : vector<16x32x128xf32> to vector<16x128xf32>
    %7 = arith.addf %3, %6 : vector<16x128xf32>
    %c0_5 = arith.constant 0 : index
    %c0_6 = arith.constant 0 : index
    %8 = vector.load %arg8[%c0_5, %c0_6] : memref<16x128xf32, #tpu.memory_space<vmem>>, vector<16x128xf32>
    tpu.vector_store %arg8[%c0_5, %c0_6], %7 {strides = array<i32>} : memref<16x128xf32, #tpu.memory_space<vmem>>, vector<16x128xf32>,
    %c0_i32_7 = arith.constant 0 : i32
    %9 = arith.cmpi eq, %arg1, %c0_i32_7 : i32
    %10 = arith.extui %9 : i1 to i32
    %c0_i32_8 = arith.constant 0 : i32
    %11 = arith.cmpi ne, %10, %c0_i32_8 : i32
    scf.if %11 {
      %c0_9 = arith.constant 0 : index
      %c0_10 = arith.constant 0 : index
      %12 = vector.load %arg8[%c0_9, %c0_10] : memref<16x128xf32, #tpu.memory_space<vmem>>, vector<16x128xf32>
      %cst_11 = arith.constant 3.125000e-02 : f32
      %13 = vector.broadcast %cst_11 : f32 to vector<16x128xf32>
      %14 = arith.mulf %12, %13 : vector<16x128xf32>
      %c0_12 = arith.constant 0 : index
      %c0_13 = arith.constant 0 : index
      %15 = vector.load %arg3[%c0_12, %c0_13] : memref<128x256xf32, #tpu.memory_space<vmem>>, vector<128x256xf32>
      %cst_14 = arith.constant dense<0.000000e+00> : vector<16x256xf32>
      %16 = tpu.matmul %14, %15, %cst_14 {dimension_numbers = #tpu.dot_dimension_numbers<[1], [0], [0], [1], [0, 0, 1, 1], [], []>} : vector<16x128xf32>, vector<128x256xf32>, vector<16x256xf32> -> vector<16x256xf32>
      %c0_15 = arith.constant 0 : index
      %c0_16 = arith.constant 0 : index
      %17 = vector.load %arg4[%c0_15, %c0_16] : memref<1x256xf32, #tpu.memory_space<vmem>>, vector<1x256xf32>
      %18 = vector.broadcast %17 : vector<1x256xf32> to vector<16x256xf32>
      %19 = arith.addf %16, %18 : vector<16x256xf32>
      %c0_17 = arith.constant 0 : index
      %c0_18 = arith.constant 0 : index
      %20 = vector.load %arg5[%c0_17, %c0_18] : memref<1x256xf32, #tpu.memory_space<vmem>>, vector<1x256xf32>
      %c0_19 = arith.constant 0 : index
      %c0_20 = arith.constant 0 : index
      %21 = vector.load %arg6[%c0_19, %c0_20] : memref<1x256xf32, #tpu.memory_space<vmem>>, vector<1x256xf32>
      %cst_21 = arith.constant dense<0.000000e+00> : vector<256xf32>
      %22 = vector.multi_reduction <add>, %19, %cst_21 [0] : vector<16x256xf32> to vector<256xf32>
      %23 = vector.shape_cast %22 : vector<256xf32> to vector<1x256xf32>
      %cst_22 = arith.constant 1.600000e+01 : f32
      %24 = vector.broadcast %cst_22 : f32 to vector<1x256xf32>
      %25 = arith.divf %23, %24 : vector<1x256xf32>
      %26 = vector.broadcast %25 : vector<1x256xf32> to vector<16x256xf32>
      %27 = arith.subf %19, %26 : vector<16x256xf32>
      %28 = arith.mulf %27, %27 : vector<16x256xf32>
      %cst_23 = arith.constant dense<0.000000e+00> : vector<256xf32>
      %29 = vector.multi_reduction <add>, %28, %cst_23 [0] : vector<16x256xf32> to vector<256xf32>
      %30 = vector.shape_cast %29 : vector<256xf32> to vector<1x256xf32>
      %cst_24 = arith.constant 1.600000e+01 : f32
      %31 = vector.broadcast %cst_24 : f32 to vector<1x256xf32>
      %32 = arith.divf %30, %31 : vector<1x256xf32>
      %cst_25 = arith.constant 9.99999974E-6 : f32
      %33 = vector.broadcast %cst_25 : f32 to vector<1x256xf32>
      %34 = arith.addf %32, %33 : vector<1x256xf32>
      %35 = math.rsqrt %34 : vector<1x256xf32>
      %36 = vector.broadcast %35 : vector<1x256xf32> to vector<16x256xf32>
      %37 = arith.mulf %27, %36 : vector<16x256xf32>
      %38 = vector.broadcast %20 : vector<1x256xf32> to vector<16x256xf32>
      %39 = arith.mulf %37, %38 : vector<16x256xf32>
      %40 = vector.broadcast %21 : vector<1x256xf32> to vector<16x256xf32>
      %41 = arith.addf %39, %40 : vector<16x256xf32>
      %42 = arith.mulf %41, %41 : vector<16x256xf32>
      %cst_26 = arith.constant dense<0.000000e+00> : vector<16xf32>
      %43 = vector.multi_reduction <add>, %42, %cst_26 [1] : vector<16x256xf32> to vector<16xf32>
      %44 = vector.shape_cast %43 : vector<16xf32> to vector<16x1xf32>
      %cst_27 = arith.constant 1.000000e-24 : f32
      %45 = vector.broadcast %cst_27 : f32 to vector<16x1xf32>
      %46 = arith.maximumf %44, %45 : vector<16x1xf32>
      %47 = math.rsqrt %46 : vector<16x1xf32>
      %48 = vector.broadcast %47 : vector<16x1xf32> to vector<16x256xf32>
      %49 = arith.mulf %41, %48 : vector<16x256xf32>
      %c0_28 = arith.constant 0 : index
      %c0_29 = arith.constant 0 : index
      %50 = vector.load %arg7[%c0_28, %c0_29] : memref<16x256xf32, #tpu.memory_space<vmem>>, vector<16x256xf32>
      tpu.vector_store %arg7[%c0_28, %c0_29], %49 {strides = array<i32>} : memref<16x256xf32, #tpu.memory_space<vmem>>, vector<16x256xf32>,
    } else {
    }
    return
  }
  func.func @transform_0(%arg0: i32, %arg1: i32) -> (i32, i32, i32) {
    %c0_i32 = arith.constant 0 : i32
    %c0_i32_0 = arith.constant 0 : i32
    return %arg0, %arg1, %c0_i32 : i32, i32, i32
  }
  func.func @transform_1(%arg0: i32, %arg1: i32) -> (i32, i32) {
    %c0_i32 = arith.constant 0 : i32
    %c0_i32_0 = arith.constant 0 : i32
    %c0_i32_1 = arith.constant 0 : i32
    return %c0_i32, %c0_i32_0 : i32, i32
  }
  func.func @transform_2(%arg0: i32, %arg1: i32) -> (i32, i32) {
    %c0_i32 = arith.constant 0 : i32
    %c0_i32_0 = arith.constant 0 : i32
    %c0_i32_1 = arith.constant 0 : i32
    return %c0_i32, %c0_i32_0 : i32, i32
  }
  func.func @transform_3(%arg0: i32, %arg1: i32) -> (i32, i32) {
    %c0_i32 = arith.constant 0 : i32
    %c0_i32_0 = arith.constant 0 : i32
    %c0_i32_1 = arith.constant 0 : i32
    return %c0_i32, %c0_i32_0 : i32, i32
  }
  func.func @transform_4(%arg0: i32, %arg1: i32) -> (i32, i32) {
    %c0_i32 = arith.constant 0 : i32
    %c0_i32_0 = arith.constant 0 : i32
    %c0_i32_1 = arith.constant 0 : i32
    return %c0_i32, %c0_i32_0 : i32, i32
  }
  func.func @transform_5(%arg0: i32, %arg1: i32) -> (i32, i32) {
    %c0_i32 = arith.constant 0 : i32
    %c0_i32_0 = arith.constant 0 : i32
    return %arg0, %c0_i32 : i32, i32
  }
}

module attributes {stable_mosaic.version = 11 : i64} {
  func.func @pool_fc_bn_l2_kernel(%arg0: i32, %arg1: i32, %arg2: memref<16x32x128xbf16, #tpu.memory_space<vmem>>, %arg3: memref<128x256xf32, #tpu.memory_space<vmem>>, %arg4: memref<1x256xf32, #tpu.memory_space<vmem>>, %arg5: memref<1x256xf32, #tpu.memory_space<vmem>>, %arg6: memref<1x256xf32, #tpu.memory_space<vmem>>, %arg7: memref<16x256xf32, #tpu.memory_space<vmem>>, %arg8: memref<16x128xf32, #tpu.memory_space<vmem>>) attributes {dimension_semantics = [#tpu.dimension_semantics<parallel>, #tpu.dimension_semantics<arbitrary>], iteration_bounds = array<i64: 1, 1>, scalar_prefetch = 0 : i64, scratch_operands = 1 : i64, tpu.core_type = #tpu.core_type<tc>, window_params = [{transform_indices = @transform_0, window_bounds = array<i64: 16, 32, 128>}, {pipeline_mode = #tpu.pipeline_mode<synchronous>, transform_indices = @transform_1, window_bounds = array<i64: 128, 256>}, {pipeline_mode = #tpu.pipeline_mode<synchronous>, transform_indices = @transform_2, window_bounds = array<i64: 1, 256>}, {pipeline_mode = #tpu.pipeline_mode<synchronous>, transform_indices = @transform_3, window_bounds = array<i64: 1, 256>}, {pipeline_mode = #tpu.pipeline_mode<synchronous>, transform_indices = @transform_4, window_bounds = array<i64: 1, 256>}, {transform_indices = @transform_5, window_bounds = array<i64: 16, 256>}]} {
    %c0_i32 = arith.constant 0 : i32
    %0 = arith.cmpi eq, %arg1, %c0_i32 : i32
    %1 = arith.extui %0 : i1 to i32
    %c0_i32_0 = arith.constant 0 : i32
    %2 = arith.cmpi ne, %1, %c0_i32_0 : i32
    scf.if %2 {
      %cst_9 = arith.constant 0.000000e+00 : f32
      %12 = vector.broadcast %cst_9 : f32 to vector<16x128xf32>
      %c0_10 = arith.constant 0 : index
      %c0_11 = arith.constant 0 : index
      %13 = vector.load %arg8[%c0_10, %c0_11] : memref<16x128xf32, #tpu.memory_space<vmem>>, vector<16x128xf32>
      tpu.vector_store %arg8[%c0_10, %c0_11], %12 {strides = array<i32>} : memref<16x128xf32, #tpu.memory_space<vmem>>, vector<16x128xf32>,
    } else {
    }
    %c0 = arith.constant 0 : index
    %c0_1 = arith.constant 0 : index
    %3 = vector.load %arg8[%c0, %c0_1] : memref<16x128xf32, #tpu.memory_space<vmem>>, vector<16x128xf32>
    %c0_2 = arith.constant 0 : index
    %c0_3 = arith.constant 0 : index
    %c0_4 = arith.constant 0 : index
    %4 = vector.load %arg2[%c0_2, %c0_3, %c0_4] : memref<16x32x128xbf16, #tpu.memory_space<vmem>>, vector<16x32x128xbf16>
    %5 = arith.extf %4 : vector<16x32x128xbf16> to vector<16x32x128xf32>
    %cst = arith.constant dense<0.000000e+00> : vector<16x128xf32>
    %6 = vector.multi_reduction <add>, %5, %cst [1] : vector<16x32x128xf32> to vector<16x128xf32>
    %7 = arith.addf %3, %6 : vector<16x128xf32>
    %c0_5 = arith.constant 0 : index
    %c0_6 = arith.constant 0 : index
    %8 = vector.load %arg8[%c0_5, %c0_6] : memref<16x128xf32, #tpu.memory_space<vmem>>, vector<16x128xf32>
    tpu.vector_store %arg8[%c0_5, %c0_6], %7 {strides = array<i32>} : memref<16x128xf32, #tpu.memory_space<vmem>>, vector<16x128xf32>,
    %c0_i32_7 = arith.constant 0 : i32
    %9 = arith.cmpi eq, %arg1, %c0_i32_7 : i32
    %10 = arith.extui %9 : i1 to i32
    %c0_i32_8 = arith.constant 0 : i32
    %11 = arith.cmpi ne, %10, %c0_i32_8 : i32
    scf.if %11 {
      %c0_9 = arith.constant 0 : index
      %c0_10 = arith.constant 0 : index
      %12 = vector.load %arg8[%c0_9, %c0_10] : memref<16x128xf32, #tpu.memory_space<vmem>>, vector<16x128xf32>
      %cst_11 = arith.constant 3.125000e-02 : f32
      %13 = vector.broadcast %cst_11 : f32 to vector<16x128xf32>
      %14 = arith.mulf %12, %13 : vector<16x128xf32>
      %c0_12 = arith.constant 0 : index
      %c0_13 = arith.constant 0 : index
      %15 = vector.load %arg3[%c0_12, %c0_13] : memref<128x256xf32, #tpu.memory_space<vmem>>, vector<128x256xf32>
      %cst_14 = arith.constant dense<0.000000e+00> : vector<16x256xf32>
      %16 = tpu.matmul %14, %15, %cst_14 {dimension_numbers = #tpu.dot_dimension_numbers<[1], [0], [0], [1], [0, 0, 1, 1], [], []>} : vector<16x128xf32>, vector<128x256xf32>, vector<16x256xf32> -> vector<16x256xf32>
      %c0_15 = arith.constant 0 : index
      %c0_16 = arith.constant 0 : index
      %17 = vector.load %arg4[%c0_15, %c0_16] : memref<1x256xf32, #tpu.memory_space<vmem>>, vector<1x256xf32>
      %18 = vector.broadcast %17 : vector<1x256xf32> to vector<16x256xf32>
      %19 = arith.addf %16, %18 : vector<16x256xf32>
      %c0_17 = arith.constant 0 : index
      %c0_18 = arith.constant 0 : index
      %20 = vector.load %arg5[%c0_17, %c0_18] : memref<1x256xf32, #tpu.memory_space<vmem>>, vector<1x256xf32>
      %c0_19 = arith.constant 0 : index
      %c0_20 = arith.constant 0 : index
      %21 = vector.load %arg6[%c0_19, %c0_20] : memref<1x256xf32, #tpu.memory_space<vmem>>, vector<1x256xf32>
      %cst_21 = arith.constant dense<0.000000e+00> : vector<256xf32>
      %22 = vector.multi_reduction <add>, %19, %cst_21 [0] : vector<16x256xf32> to vector<256xf32>
      %23 = vector.shape_cast %22 : vector<256xf32> to vector<1x256xf32>
      %cst_22 = arith.constant 1.600000e+01 : f32
      %24 = vector.broadcast %cst_22 : f32 to vector<1x256xf32>
      %25 = arith.divf %23, %24 : vector<1x256xf32>
      %26 = vector.broadcast %25 : vector<1x256xf32> to vector<16x256xf32>
      %27 = arith.subf %19, %26 : vector<16x256xf32>
      %28 = arith.mulf %27, %27 : vector<16x256xf32>
      %cst_23 = arith.constant dense<0.000000e+00> : vector<256xf32>
      %29 = vector.multi_reduction <add>, %28, %cst_23 [0] : vector<16x256xf32> to vector<256xf32>
      %30 = vector.shape_cast %29 : vector<256xf32> to vector<1x256xf32>
      %cst_24 = arith.constant 1.600000e+01 : f32
      %31 = vector.broadcast %cst_24 : f32 to vector<1x256xf32>
      %32 = arith.divf %30, %31 : vector<1x256xf32>
      %cst_25 = arith.constant 9.99999974E-6 : f32
      %33 = vector.broadcast %cst_25 : f32 to vector<1x256xf32>
      %34 = arith.addf %32, %33 : vector<1x256xf32>
      %35 = math.rsqrt %34 : vector<1x256xf32>
      %36 = vector.broadcast %35 : vector<1x256xf32> to vector<16x256xf32>
      %37 = arith.mulf %27, %36 : vector<16x256xf32>
      %38 = vector.broadcast %20 : vector<1x256xf32> to vector<16x256xf32>
      %39 = arith.mulf %37, %38 : vector<16x256xf32>
      %40 = vector.broadcast %21 : vector<1x256xf32> to vector<16x256xf32>
      %41 = arith.addf %39, %40 : vector<16x256xf32>
      %42 = arith.mulf %41, %41 : vector<16x256xf32>
      %cst_26 = arith.constant dense<0.000000e+00> : vector<16xf32>
      %43 = vector.multi_reduction <add>, %42, %cst_26 [1] : vector<16x256xf32> to vector<16xf32>
      %44 = vector.shape_cast %43 : vector<16xf32> to vector<16x1xf32>
      %cst_27 = arith.constant 1.000000e-24 : f32
      %45 = vector.broadcast %cst_27 : f32 to vector<16x1xf32>
      %46 = arith.maximumf %44, %45 : vector<16x1xf32>
      %47 = math.rsqrt %46 : vector<16x1xf32>
      %48 = vector.broadcast %47 : vector<16x1xf32> to vector<16x256xf32>
      %49 = arith.mulf %41, %48 : vector<16x256xf32>
      %c0_28 = arith.constant 0 : index
      %c0_29 = arith.constant 0 : index
      %50 = vector.load %arg7[%c0_28, %c0_29] : memref<16x256xf32, #tpu.memory_space<vmem>>, vector<16x256xf32>
      tpu.vector_store %arg7[%c0_28, %c0_29], %49 {strides = array<i32>} : memref<16x256xf32, #tpu.memory_space<vmem>>, vector<16x256xf32>,
    } else {
    }
    return
  }
  func.func @transform_0(%arg0: i32, %arg1: i32) -> (i32, i32, i32) {
    %c0_i32 = arith.constant 0 : i32
    %c0_i32_0 = arith.constant 0 : i32
    return %arg0, %arg1, %c0_i32 : i32, i32, i32
  }
  func.func @transform_1(%arg0: i32, %arg1: i32) -> (i32, i32) {
    %c0_i32 = arith.constant 0 : i32
    %c0_i32_0 = arith.constant 0 : i32
    %c0_i32_1 = arith.constant 0 : i32
    return %c0_i32, %c0_i32_0 : i32, i32
  }
  func.func @transform_2(%arg0: i32, %arg1: i32) -> (i32, i32) {
    %c0_i32 = arith.constant 0 : i32
    %c0_i32_0 = arith.constant 0 : i32
    %c0_i32_1 = arith.constant 0 : i32
    return %c0_i32, %c0_i32_0 : i32, i32
  }
  func.func @transform_3(%arg0: i32, %arg1: i32) -> (i32, i32) {
    %c0_i32 = arith.constant 0 : i32
    %c0_i32_0 = arith.constant 0 : i32
    %c0_i32_1 = arith.constant 0 : i32
    return %c0_i32, %c0_i32_0 : i32, i32
  }
  func.func @transform_4(%arg0: i32, %arg1: i32) -> (i32, i32) {
    %c0_i32 = arith.constant 0 : i32
    %c0_i32_0 = arith.constant 0 : i32
    %c0_i32_1 = arith.constant 0 : i32
    return %c0_i32, %c0_i32_0 : i32, i32
  }
  func.func @transform_5(%arg0: i32, %arg1: i32) -> (i32, i32) {
    %c0_i32 = arith.constant 0 : i32
    %c0_i32_0 = arith.constant 0 : i32
    return %arg0, %c0_i32 : i32, i32
  }
}

</mosaic_0001>

<bundles_post_ra>
// kernel: tpu_custom_call.1
= control target key start
LH: loop header
LB: loop body
LE: loop exit
PB: predicated region body
PF: predicated region fallthrough
CT: control target
= control target key end

     0   :  { %10 = vsyncpa [#allocation4], 0  ;;  %s1177_s0 = inlined_call_operand.hbm [shape: bf16[16,32,128], index: 0, kind: input, shape index: {}]   ;;  %s1178_s1 = inlined_call_operand.hbm [shape: f32[128,256], index: 1, kind: input, shape index: {}]   ;;  %s1179_s2 = inlined_call_operand.hbm [shape: f32[1,256], index: 2, kind: input, shape index: {}]   ;;  %s1180_s3 = inlined_call_operand.vmem [shape: f32[1,256], index: 3, kind: input, shape index: {}]   ;;  %s1181_s4 = inlined_call_operand.hbm [shape: f32[1,256], index: 4, kind: input, shape index: {}]   ;;  %s1182_s5 = inlined_call_operand.hbm [shape: f32[16,256], index: 5, kind: output, shape index: {}]  }
   0x1   :  { %11 = vsyncpa [#allocation7], 0 }
   0x2   :  { %12 = vsyncpa [#allocation10], 0  ;;  %s31_s20 = sshll.u32 %s1178_s1, 4  ;;  %s32_s20 = int_to_ptr.hbm [resolvable:$true] %s31_s20 }
   0x3   :  { %13 = vsyncpa [#allocation5], 0  ;;  %s987_s21 = smov [#allocation6]   ;;  %s18_s25 = sshll.u32 %s1177_s0, 4  ;;  %s19_s25 = int_to_ptr.hbm [resolvable:$true] %s18_s25 }
   0x4   :  { %s33_s22 = sshll.u32 %s987_s21, 4  ;;  %s988_s26 = smov 256   ;;  %s34_s22 = int_to_ptr.vmem [resolvable:$true] %s33_s22 }
   0x5   :  { %s989_s27 = smov 16   ;;  %s990_s28 = smov [#allocation3]  }
   0x6   :  { %39 = dma.hbm_to_vmem [thread:$0]  %s32_s20, 4096, %s34_s22, [#allocation7], %s988_s26, %s988_s26, %s989_s27  }
   0x7   :  { %s20_s29 = sshll.u32 %s990_s28, 4  ;;  %s991_s1 = smov 64   ;;  %s21_s29 = int_to_ptr.vmem [resolvable:$true] %s20_s29 }
   0x8   :  { %s992_s30 = smov 4   ;;  %s45_s8 = sshll.u32 %s1179_s2, 4  ;;  %s46_s8 = int_to_ptr.hbm [resolvable:$true] %s45_s8 }
   0x9   :  { %26 = dma.hbm_to_vmem [thread:$0]  %s19_s25, 4096, %s21_s29, [#allocation4], %s991_s1, %s991_s1, %s992_s30  }
   0xa   :  { %s993_s9 = smov [#allocation8]   ;;  %s58_s12 = sshll.u32 %s1181_s4, 4  ;;  %s59_s12 = int_to_ptr.hbm [resolvable:$true] %s58_s12 }
   0xb   :  { %s47_s0 = sshll.u32 %s993_s9, 4  ;;  %s994_s13 = smov [#allocation9]   ;;  %s48_s0 = int_to_ptr.vmem [resolvable:$true] %s47_s0 }
   0xc   :  { %50 = dma.hbm_to_vmem [thread:$0]  %s46_s8, 32, %s48_s0, [#allocation7]  }
   0xd   :  { %s60_s14 = sshll.u32 %s994_s13, 4  ;;  %s61_s14 = int_to_ptr.vmem [resolvable:$true] %s60_s14 }
   0xe   :  { %63 = dma.hbm_to_vmem [thread:$0]  %s59_s12, 32, %s61_s14, [#allocation10]  }
   0xf   :  { %979 = dma.done.wait [#allocation4], 4096  }
  0x10   :  { %980 = vsyncadd [#allocation4], 4294963200 }
  0x11   :  { %981 = dma.done.wait [#allocation7], 4128  }
  0x12   :  { %982 = vsyncadd [#allocation7], 4294963168 }
  0x13   :  { %983 = dma.done.wait [#allocation10], 32  }
  0x14   :  { %984 = vsyncadd [#allocation10], 4294967264  ;;  %v440_v0 = vld [vmem:[#allocation6 + $0xf0] sm:$0xff]  ;;  %v441_v1 = vld [vmem:[#allocation6 + $0xf8] sm:$0xff]  ;;  %vm376_vm0 = vcmask 1041409   ;;  %vm378_vm1 = vcmask 1042434  }
  0x15   :  { %v438_v2 = vld [vmem:[#allocation6 + $0xe0] sm:$0xff]  ;;  %807 = vmatpush.msra.mxu2 %v440_v0  ;;  %823 = vmatpush.msra.mxu3 %v441_v1  ;;  %v439_v3 = vld [vmem:[#allocation6 + $0xe8] sm:$0xff]  ;;  %v436_v4 = vld [vmem:[#allocation6 + $0xd0] sm:$0xff]  ;;  %vm380_vm2 = vcmask 1043459   ;;  %vm382_vm3 = vcmask 1044484   ;;  %vm384_vm4 = vcmask 1045509  }
  0x16   :  { %v437_v5 = vld [vmem:[#allocation6 + $0xd8] sm:$0xff]  ;;  %448 = vmatpush.msra.mxu0 %v440_v0  ;;  %471 = vmatpush.msra.mxu1 %v441_v1  ;;  %v434_v6 = vld [vmem:[#allocation6 + $0xc0] sm:$0xff]  ;;  %v435_v7 = vld [vmem:[#allocation6 + $0xc8] sm:$0xff]  ;;  %vm386_vm5 = vcmask 1046534   ;;  %vm388_vm6 = vcmask 1047559   ;;  %s633_s18 = sshll.u32 %s1182_s5, 4  ;;  %s634_s18 = int_to_ptr.hbm [resolvable:$true] %s633_s18 }
  0x17   :  { %808 = vmatpush.msra.mxu2 %v438_v2  ;;  %824 = vmatpush.msra.mxu3 %v439_v3  ;;  %v432_v8 = vld [vmem:[#allocation6 + $0xb0] sm:$0xff]  ;;  %v433_v9 = vld [vmem:[#allocation6 + $0xb8] sm:$0xff]  ;;  %v430_v10 = vld [vmem:[#allocation6 + $0xa0] sm:$0xff] }
  0x18   :  { %449 = vmatpush.msra.mxu0 %v438_v2  ;;  %472 = vmatpush.msra.mxu1 %v439_v3  ;;  %v431_v11 = vld [vmem:[#allocation6 + $0xa8] sm:$0xff]  ;;  %v428_v12 = vld [vmem:[#allocation6 + $0x90] sm:$0xff]  ;;  %v429_v13 = vld [vmem:[#allocation6 + $0x98] sm:$0xff] }
  0x19   :  { %809 = vmatpush.msra.mxu2 %v436_v4  ;;  %825 = vmatpush.msra.mxu3 %v437_v5  ;;  %v426_v14 = vld [vmem:[#allocation6 + $0x80] sm:$0xff]  ;;  %v427_v15 = vld [vmem:[#allocation6 + $0x88] sm:$0xff]  ;;  %v1048_v20 = vld [vmem:[#allocation3 + $0x90] sm:$0xff]  }
  0x1a   :  { %450 = vmatpush.msra.mxu0 %v436_v4  ;;  %473 = vmatpush.msra.mxu1 %v437_v5  ;;  %v1042_v16 = vld [vmem:[#allocation3 + $0x80] sm:$0xff]   ;;  %v1046_v19 = vld [vmem:[#allocation3 + $0x88] sm:$0xff]   ;;  %v1050_v21 = vld [vmem:[#allocation3 + $0x98] sm:$0xff]   ;;  %v722_v26 = vunpack.c.l.bf16 %v1048_v20  ;;  %v723_v27 = vunpack.c.h.bf16 %v1048_v20 }
  0x1b   :  { %810 = vmatpush.msra.mxu2 %v434_v6  ;;  %826 = vmatpush.msra.mxu3 %v435_v7  ;;  %v714_v17 = vunpack.c.l.bf16 %v1042_v16  ;;  %v715_v18 = vunpack.c.h.bf16 %v1042_v16  ;;  %v424_v22 = vld [vmem:[#allocation6 + $0x70] sm:$0xff]  ;;  %v425_v23 = vld [vmem:[#allocation6 + $0x78] sm:$0xff]  ;;  %v718_v24 = vunpack.c.l.bf16 %v1046_v19  ;;  %v719_v25 = vunpack.c.h.bf16 %v1046_v19  ;;  %v1056_v28 = vld [vmem:[#allocation3 + $0xa0] sm:$0xff]  }
  0x1c   :  { %451 = vmatpush.msra.mxu0 %v434_v6  ;;  %474 = vmatpush.msra.mxu1 %v435_v7  ;;  %v1058_v29 = vld [vmem:[#allocation3 + $0xa8] sm:$0xff]   ;;  %v1060_v30 = vld [vmem:[#allocation3 + $0xb0] sm:$0xff]   ;;  %v726_v31 = vunpack.c.l.bf16 %v1050_v21  ;;  %v727_v32 = vunpack.c.h.bf16 %v1050_v21  ;;  %v730_v33 = vunpack.c.l.bf16 %v1056_v28  ;;  %v731_v34 = vunpack.c.h.bf16 %v1056_v28  ;;  %v1066_v35 = vld [vmem:[#allocation3 + $0xb8] sm:$0xff]  }
  0x1d   :  { %811 = vmatpush.msra.mxu2 %v432_v8  ;;  %827 = vmatpush.msra.mxu3 %v433_v9  ;;  %v799_v36 = vld [vmem:[#allocation3 + $0xc0] sm:$0xff]   ;;  %v1068_v37 = vld [vmem:[#allocation3 + $0xc8] sm:$0xff]   ;;  %v734_v38 = vunpack.c.l.bf16 %v1058_v29  ;;  %v735_v39 = vunpack.c.h.bf16 %v1058_v29  ;;  %v738_v40 = vunpack.c.l.bf16 %v1060_v30  ;;  %v739_v41 = vunpack.c.h.bf16 %v1060_v30  ;;  %v801_v42 = vld [vmem:[#allocation3 + $0xd0] sm:$0xff]  }
  0x1e   :  { %452 = vmatpush.msra.mxu0 %v432_v8  ;;  %475 = vmatpush.msra.mxu1 %v433_v9  ;;  %v1074_v43 = vld [vmem:[#allocation3 + $0xd8] sm:$0xff]   ;;  %v1076_v44 = vld [vmem:[#allocation3 + $0xe0] sm:$0xff]   ;;  %v742_v45 = vunpack.c.l.bf16 %v1066_v35  ;;  %v743_v46 = vunpack.c.h.bf16 %v1066_v35  ;;  %v746_v47 = vunpack.c.l.bf16 %v799_v36  ;;  %v747_v48 = vunpack.c.h.bf16 %v799_v36  ;;  %v1080_v49 = vld [vmem:[#allocation3 + $0xe8] sm:$0xff]  }
  0x1f   :  { %812 = vmatpush.msra.mxu2 %v430_v10  ;;  %828 = vmatpush.msra.mxu3 %v431_v11  ;;  %v1082_v50 = vld [vmem:[#allocation3 + $0xf0] sm:$0xff]   ;;  %v422_v51 = vld [vmem:[#allocation6 + $0x60] sm:$0xff]  ;;  %v423_v52 = vld [vmem:[#allocation6 + $0x68] sm:$0xff]  ;;  %v750_v53 = vunpack.c.l.bf16 %v1068_v37  ;;  %v751_v54 = vunpack.c.h.bf16 %v1068_v37  ;;  %v754_v55 = vunpack.c.l.bf16 %v801_v42  ;;  %v755_v56 = vunpack.c.h.bf16 %v801_v42 }
  0x20   :  { %453 = vmatpush.msra.mxu0 %v430_v10  ;;  %476 = vmatpush.msra.mxu1 %v431_v11  ;;  %v1086_v57 = vld [vmem:[#allocation3 + $0xf8] sm:$0xff]   ;;  %v758_v58 = vunpack.c.l.bf16 %v1074_v43  ;;  %v759_v59 = vunpack.c.h.bf16 %v1074_v43  ;;  %v762_v60 = vunpack.c.l.bf16 %v1076_v44  ;;  %v763_v61 = vunpack.c.h.bf16 %v1076_v44  ;;  %v1092_v62 = vld [vmem:[#allocation3] sm:$0xff]   ;;  %v420_v63 = vld [vmem:[#allocation6 + $0x50] sm:$0xff] }
  0x21   :  { %813 = vmatpush.msra.mxu2 %v428_v12  ;;  %829 = vmatpush.msra.mxu3 %v429_v13  ;;  %v421_v0 = vld [vmem:[#allocation6 + $0x58] sm:$0xff]  ;;  %v766_v1 = vunpack.c.l.bf16 %v1080_v49  ;;  %v767_v2 = vunpack.c.h.bf16 %v1080_v49  ;;  %v770_v3 = vunpack.c.l.bf16 %v1082_v50  ;;  %v771_v4 = vunpack.c.h.bf16 %v1082_v50  ;;  %v1104_v9 = vld [vmem:[#allocation3 + $0x8] sm:$0xff]   ;;  %v418_v10 = vld [vmem:[#allocation6 + $0x40] sm:$0xff] }
  0x22   :  { %454 = vmatpush.msra.mxu0 %v428_v12  ;;  %477 = vmatpush.msra.mxu1 %v429_v13  ;;  %v774_v5 = vunpack.c.l.bf16 %v1086_v57  ;;  %v775_v6 = vunpack.c.h.bf16 %v1086_v57  ;;  %v288_v7 = vadd.f32 %v715_v18, %v714_v17  ;;  %v297_v8 = vadd.f32 %v723_v27, %v722_v26  ;;  %v419_v11 = vld [vmem:[#allocation6 + $0x48] sm:$0xff]  ;;  %v417_v26 = vld [vmem:[#allocation6 + $0x38] sm:$0xff]  ;;  %v414_v37 = vld [vmem:[#allocation6 + $0x20] sm:$0xff] }
  0x23   :  { %814 = vmatpush.msra.mxu2 %v426_v14  ;;  %830 = vmatpush.msra.mxu3 %v427_v15  ;;  %v306_v12 = vadd.f32 %v731_v34, %v730_v33  ;;  %v315_v13 = vadd.f32 %v739_v41, %v738_v40  ;;  %v333_v17 = vadd.f32 %v755_v56, %v754_v55  ;;  %v651_v18 = vunpack.c.h.bf16 %v1092_v62  ;;  %v415_v40 = vld [vmem:[#allocation6 + $0x28] sm:$0xff]  ;;  %v412_v44 = vld [vmem:[#allocation6 + $0x10] sm:$0xff] }
  0x24   :  { %455 = vmatpush.msra.mxu0 %v426_v14  ;;  %478 = vmatpush.msra.mxu1 %v427_v15  ;;  %v324_v14 = vadd.f32 %v747_v48, %v746_v47  ;;  %v650_v15 = vunpack.c.l.bf16 %v1092_v62  ;;  %v289_v20 = vadd.f32 %v718_v24, %v288_v7  ;;  %v298_v16 = vadd.f32 %v726_v31, %v297_v8 }
  0x25   :  { %815 = vmatpush.msra.mxu2 %v424_v22  ;;  %831 = vmatpush.msra.mxu3 %v425_v23  ;;  %v307_v27 = vadd.f32 %v734_v38, %v306_v12  ;;  %v316_v28 = vadd.f32 %v742_v45, %v315_v13  ;;  %v654_v33 = vunpack.c.l.bf16 %v1104_v9  ;;  %v334_v34 = vadd.f32 %v758_v58, %v333_v17  ;;  %v413_v45 = vld [vmem:[#allocation6 + $0x18] sm:$0xff] }
  0x26   :  { %456 = vmatpush.msra.mxu0 %v424_v22  ;;  %479 = vmatpush.msra.mxu1 %v425_v23  ;;  %v1112_v22 = vld [vmem:[#allocation3 + $0x10] sm:$0xff]   ;;  %v325_v30 = vadd.f32 %v750_v53, %v324_v14  ;;  %v290_v24 = vadd.f32 %v719_v25, %v289_v20  ;;  %v299_v31 = vadd.f32 %v727_v32, %v298_v16  ;;  %v655_v36 = vunpack.c.h.bf16 %v1104_v9  ;;  %v411_v53 = vld [vmem:[#allocation6 + $0x8] sm:$0xff] }
  0x27   :  { %816 = vmatpush.msra.mxu2 %v422_v51  ;;  %832 = vmatpush.msra.mxu3 %v423_v52  ;;  %v416_v23 = vld [vmem:[#allocation6 + $0x30] sm:$0xff]  ;;  %v308_v38 = vadd.f32 %v735_v39, %v307_v27  ;;  %v317_v41 = vadd.f32 %v743_v46, %v316_v28  ;;  %v658_v19 = vunpack.c.l.bf16 %v1112_v22  ;;  %v335_v32 = vadd.f32 %v759_v59, %v334_v34 }
  0x28   :  { %457 = vmatpush.msra.mxu0 %v422_v51  ;;  %480 = vmatpush.msra.mxu1 %v423_v52  ;;  %v326_v42 = vadd.f32 %v751_v54, %v325_v30  ;;  %v291_v21 = vrot.slane %v290_v24, 4  ;;  %v300_v25 = vrot.slane %v299_v31, 4  ;;  %v342_v43 = vadd.f32 %v763_v61, %v762_v60  ;;  %v410_v52 = vld [vmem:[#allocation6] sm:$0xff] }
  0x29   :  { %817 = vmatpush.msra.mxu2 %v420_v63  ;;  %833 = vmatpush.msra.mxu3 %v421_v0  ;;  %v309_v47 = vrot.slane %v308_v38, 4  ;;  %v318_v48 = vrot.slane %v317_v41, 4  ;;  %v351_v39 = vadd.f32 %v771_v4, %v770_v3  ;;  %v336_v50 = vrot.slane %v335_v32, 4 }
  0x2a   :  { %458 = vmatpush.msra.mxu0 %v420_v63  ;;  %481 = vmatpush.msra.mxu1 %v421_v0  ;;  %v327_v29 = vrot.slane %v326_v42, 4  ;;  %v292_v35 = vadd.f32 %v291_v21, %v290_v24  ;;  %v301_v46 = vadd.f32 %v300_v25, %v299_v31  ;;  %v343_v51 = vadd.f32 %v766_v1, %v342_v43  ;;  %v1135_v24 = vld [vmem:[#allocation3 + $0x18] sm:$0xff]  }
  0x2b   :  { %818 = vmatpush.msra.mxu2 %v418_v10  ;;  %834 = vmatpush.msra.mxu3 %v419_v11  ;;  %v310_v54 = vadd.f32 %v309_v47, %v308_v38  ;;  %v319_v55 = vadd.f32 %v318_v48, %v317_v41  ;;  %v352_v58 = vadd.f32 %v774_v5, %v351_v39  ;;  %v779_v38 = vld [vmem:[#allocation3 + $0x20] sm:$0xff]   ;;  %v659_v25 = vunpack.c.h.bf16 %v1112_v22  ;;  %v781_v48 = vld [vmem:[#allocation3 + $0x30] sm:$0xff]  }
  0x2c   :  { %459 = vmatpush.msra.mxu0 %v418_v10  ;;  %482 = vmatpush.msra.mxu1 %v419_v11  ;;  %v328_v56 = vadd.f32 %v327_v29, %v326_v42  ;;  %v293_v59 = vrot.slane %v292_v35, 2  ;;  %v302_v60 = vrot.slane %v301_v46, 2  ;;  %v337_v61 = vadd.f32 %v336_v50, %v335_v32  ;;  %v1139_v32 = vld [vmem:[#allocation3 + $0x28] sm:$0xff]   ;;  %v782_v50 = vld [vmem:[#allocation3 + $0x38] sm:$0xff]  }
  0x2d   :  { %819 = vmatpush.msra.mxu2 %v416_v23  ;;  %835 = vmatpush.msra.mxu3 %v417_v26  ;;  %v344_v63 = vadd.f32 %v767_v2, %v343_v51  ;;  %v311_v0 = vrot.slane %v310_v54, 2  ;;  %v320_v1 = vrot.slane %v319_v55, 2  ;;  %v353_v4 = vadd.f32 %v775_v6, %v352_v58  ;;  %v783_v51 = vld [vmem:[#allocation3 + $0x40] sm:$0xff]  }
  0x2e   :  { %460 = vmatpush.msra.mxu0 %v416_v23  ;;  %483 = vmatpush.msra.mxu1 %v417_v26  ;;  %v329_v3 = vrot.slane %v328_v56, 2  ;;  %v294_v5 = vadd.f32 %v293_v59, %v292_v35  ;;  %v303_v7 = vadd.f32 %v302_v60, %v301_v46  ;;  %v338_v8 = vrot.slane %v337_v61, 2 }
  0x2f   :  { %820 = vmatpush.msra.mxu2 %v414_v37  ;;  %836 = vmatpush.msra.mxu3 %v415_v40  ;;  %v345_v10 = vrot.slane %v344_v63, 4  ;;  %v312_v11 = vadd.f32 %v311_v0, %v310_v54  ;;  %v321_v12 = vadd.f32 %v320_v1, %v319_v55  ;;  %v354_v2 = vrot.slane %v353_v4, 4  ;;  %v786_v0 = vld [vmem:[#allocation3 + $0x58] sm:$0xff]  }
  0x30   :  { %461 = vmatpush.msra.mxu0 %v414_v37  ;;  %484 = vmatpush.msra.mxu1 %v415_v40  ;;  %v330_v49 = vadd.f32 %v329_v3, %v328_v56  ;;  %v295_v13 = vrot.slane %v294_v5, 1  ;;  %v304_v14 = vrot.slane %v303_v7, 1  ;;  %v339_v57 = vadd.f32 %v338_v8, %v337_v61  ;;  %v784_v56 = vld [vmem:[#allocation3 + $0x48] sm:$0xff]  }
  0x31   :  { %821 = vmatpush.msra.mxu2 %v412_v44  ;;  %837 = vmatpush.msra.mxu3 %v413_v45  ;;  %v346_v6 = vadd.f32 %v345_v10, %v344_v63  ;;  %v313_v20 = vrot.slane %v312_v11, 1  ;;  %v322_v16 = vrot.slane %v321_v12, 1  ;;  %v355_v23 = vadd.f32 %v354_v2, %v353_v4  ;;  %v785_v63 = vld [vmem:[#allocation3 + $0x50] sm:$0xff]  }
  0x32   :  { %462 = vmatpush.msra.mxu0 %v412_v44  ;;  %485 = vmatpush.msra.mxu1 %v413_v45  ;;  %v331_v17 = vrot.slane %v330_v49, 1  ;;  %v296_v26 = vadd.f32 %v295_v13, %v294_v5  ;;  %v305_v27 = vadd.f32 %v304_v14, %v303_v7  ;;  %v340_v28 = vrot.slane %v339_v57, 1  ;;  %v787_v7 = vld [vmem:[#allocation3 + $0x60] sm:$0xff]   ;;  %v789_v2 = vld [vmem:[#allocation3 + $0x70] sm:$0xff]  }
  0x33   :  { %822 = vmatpush.msra.mxu2 %v410_v52  ;;  %838 = vmatpush.msra.mxu3 %v411_v53  ;;  %v347_v30 = vrot.slane %v346_v6, 2  ;;  %v314_v31 = vadd.f32 %v313_v20, %v312_v11  ;;  %v323_v34 = vadd.f32 %v322_v16, %v321_v12  ;;  %v356_v40 = vrot.slane %v355_v23, 2  ;;  %v790_v20 = vld [vmem:[#allocation3 + $0x78] sm:$0xff]  }
  0x34   :  { %463 = vmatpush.msra.mxu0 %v410_v52  ;;  %486 = vmatpush.msra.mxu1 %v411_v53  ;;  %v332_v37 = vadd.f32 %v331_v17, %v330_v49  ;;  %v341_v41 = vadd.f32 %v340_v28, %v339_v57  ;;  %v390_v21 = vsel %vm376_vm0, %v305_v27, %v296_v26  ;;  %v662_v45 = vunpack.c.l.bf16 %v1135_v24  ;;  %v788_v49 = vld [vmem:[#allocation3 + $0x68] sm:$0xff]  }
  0x35   :  { %v348_v42 = vadd.f32 %v347_v30, %v346_v6  ;;  %v357_v43 = vadd.f32 %v356_v40, %v355_v23  ;;  %v391_v44 = vsel %vm378_vm1, %v314_v31, %v390_v21  ;;  %v663_v47 = vunpack.c.h.bf16 %v1135_v24 }
  0x36   :  { %v392_v39 = vsel %vm380_vm2, %v323_v34, %v391_v44  ;;  %v666_v35 = vunpack.c.l.bf16 %v779_v38  ;;  %v667_v46 = vunpack.c.h.bf16 %v779_v38  ;;  %v670_v54 = vunpack.c.l.bf16 %v1139_v32 }
  0x37   :  { %v349_v29 = vrot.slane %v348_v42, 1  ;;  %v358_v52 = vrot.slane %v357_v43, 1  ;;  %v393_v53 = vsel %vm382_vm3, %v332_v37, %v392_v39  ;;  %v671_v55 = vunpack.c.h.bf16 %v1139_v32 }
  0x38   :  { %v394_v59 = vsel %vm384_vm4, %v341_v41, %v393_v53  ;;  %v674_v60 = vunpack.c.l.bf16 %v781_v48  ;;  %v675_v61 = vunpack.c.h.bf16 %v781_v48  ;;  %v678_v3 = vunpack.c.l.bf16 %v782_v50 }
  0x39   :  { %v350_v58 = vadd.f32 %v349_v29, %v348_v42  ;;  %v359_v1 = vadd.f32 %v358_v52, %v357_v43  ;;  %v679_v4 = vunpack.c.h.bf16 %v782_v50  ;;  %v682_v5 = vunpack.c.l.bf16 %v783_v51 }
  0x3a   :  { %v683_v10 = vunpack.c.h.bf16 %v783_v51  ;;  %v686_v11 = vunpack.c.l.bf16 %v784_v56  ;;  %v687_v12 = vunpack.c.h.bf16 %v784_v56  ;;  %v690_v14 = vunpack.c.l.bf16 %v785_v63 }
  0x3b   :  { %v395_v8 = vsel %vm386_vm5, %v350_v58, %v394_v59  ;;  %v691_v57 = vunpack.c.h.bf16 %v785_v63  ;;  %v694_v6 = vunpack.c.l.bf16 %v786_v0  ;;  %v695_v17 = vunpack.c.h.bf16 %v786_v0 }
  0x3c   :  { %v396_v13 = vsel %vm388_vm6, %v359_v1, %v395_v8  ;;  %v698_v23 = vunpack.c.l.bf16 %v787_v7  ;;  %v699_v26 = vunpack.c.h.bf16 %v787_v7  ;;  %v702_v27 = vunpack.c.l.bf16 %v788_v49 }
  0x3d   :  { %v409_v16 = vmul.f32 0.03125, %v396_v13  ;;  %v703_v28 = vunpack.c.h.bf16 %v788_v49  ;;  %v706_v30 = vunpack.c.l.bf16 %v789_v2  ;;  %v707_v24 = vunpack.c.h.bf16 %v789_v2 }
  0x3e   :  { %v710_v31 = vunpack.c.l.bf16 %v790_v20  ;;  %v711_v34 = vunpack.c.h.bf16 %v790_v20  ;;  %v216_v37 = vadd.f32 %v651_v18, %v650_v15  ;;  %v225_v40 = vadd.f32 %v659_v25, %v658_v19 }
  0x3f   :  { %467 = vmatmul.f32.vlgmr.msra.gmra.mxu2 %v409_v16  ;;  %490 = vmatmul.f32.vlgmr.msra.gmra.mxu3 %v409_v16  ;;  %v234_v38 = vadd.f32 %v667_v46, %v666_v35  ;;  %v243_v41 = vadd.f32 %v675_v61, %v674_v60  ;;  %v252_v42 = vadd.f32 %v683_v10, %v682_v5 }
  0x40   :  { %v261_v21 = vadd.f32 %v691_v57, %v690_v14  ;;  %v217_v32 = vadd.f32 %v654_v33, %v216_v37  ;;  %v226_v43 = vadd.f32 %v662_v45, %v225_v40  ;;  %v270_v44 = vadd.f32 %v699_v26, %v698_v23 }
  0x41   :  { %v279_v48 = vadd.f32 %v707_v24, %v706_v30  ;;  %v235_v29 = vadd.f32 %v670_v54, %v234_v38  ;;  %v244_v39 = vadd.f32 %v678_v3, %v243_v41  ;;  %v253_v50 = vadd.f32 %v686_v11, %v252_v42 }
  0x42   :  { %v262_v51 = vadd.f32 %v694_v6, %v261_v21  ;;  %v218_v62 = vadd.f32 %v655_v36, %v217_v32  ;;  %v227_v15 = vadd.f32 %v663_v47, %v226_v43  ;;  %v271_v18 = vadd.f32 %v702_v27, %v270_v44 }
  0x43   :  { %v280_v22 = vadd.f32 %v710_v31, %v279_v48  ;;  %v236_v19 = vadd.f32 %v671_v55, %v235_v29  ;;  %v245_v25 = vadd.f32 %v679_v4, %v244_v39  ;;  %v254_v35 = vadd.f32 %v687_v12, %v253_v50 }
  0x44   :  { %v263_v46 = vadd.f32 %v695_v17, %v262_v51  ;;  %v219_v52 = vrot.slane %v218_v62, 4  ;;  %v228_v53 = vrot.slane %v227_v15, 4  ;;  %v272_v33 = vadd.f32 %v703_v28, %v271_v18 }
  0x45   :  { %v281_v45 = vadd.f32 %v711_v34, %v280_v22  ;;  %v237_v56 = vrot.slane %v236_v19, 4  ;;  %v246_v58 = vrot.slane %v245_v25, 4  ;;  %v255_v54 = vrot.slane %v254_v35, 4  ;;  %v442_v22 = vld [vmem:[#allocation8] sm:$0x3] }
  0x46   :  { %v264_v59 = vrot.slane %v263_v46, 4  ;;  %v220_v60 = vadd.f32 %v219_v52, %v218_v62  ;;  %v229_v61 = vadd.f32 %v228_v53, %v227_v15  ;;  %v273_v63 = vrot.slane %v272_v33, 4 }
  0x47   :  { %v282_v9 = vrot.slane %v281_v45, 4  ;;  %v238_v36 = vadd.f32 %v237_v56, %v236_v19  ;;  %v247_v47 = vadd.f32 %v246_v58, %v245_v25  ;;  %v256_v0 = vadd.f32 %v255_v54, %v254_v35 }
  0x48   :  { %v265_v1 = vadd.f32 %v264_v59, %v263_v46  ;;  %v221_v55 = vrot.slane %v220_v60, 2  ;;  %v230_v3 = vrot.slane %v229_v61, 2  ;;  %v274_v4 = vadd.f32 %v273_v63, %v272_v33 }
  0x49   :  { %v283_v5 = vadd.f32 %v282_v9, %v281_v45  ;;  %v239_v7 = vrot.slane %v238_v36, 2  ;;  %v248_v8 = vrot.slane %v247_v47, 2  ;;  %v257_v10 = vrot.slane %v256_v0, 2 }
  0x4a   :  { %v266_v11 = vrot.slane %v265_v1, 2  ;;  %v222_v12 = vadd.f32 %v221_v55, %v220_v60  ;;  %v231_v49 = vadd.f32 %v230_v3, %v229_v61  ;;  %v275_v2 = vrot.slane %v274_v4, 2 }
  0x4b   :  { %v284_v13 = vrot.slane %v283_v5, 2  ;;  %v240_v14 = vadd.f32 %v239_v7, %v238_v36  ;;  %v249_v57 = vadd.f32 %v248_v8, %v247_v47  ;;  %v258_v6 = vadd.f32 %v257_v10, %v256_v0 }
  0x4c   :  { %v267_v20 = vadd.f32 %v266_v11, %v265_v1  ;;  %v223_v16 = vrot.slane %v222_v12, 1  ;;  %v232_v17 = vrot.slane %v231_v49, 1  ;;  %v276_v23 = vadd.f32 %v275_v2, %v274_v4 }
  0x4d   :  { %v285_v26 = vadd.f32 %v284_v13, %v283_v5  ;;  %v241_v27 = vrot.slane %v240_v14, 1  ;;  %v250_v28 = vrot.slane %v249_v57, 1  ;;  %v259_v30 = vrot.slane %v258_v6, 1 }
  0x4e   :  { %v268_v24 = vrot.slane %v267_v20, 1  ;;  %v224_v31 = vadd.f32 %v223_v16, %v222_v12  ;;  %v233_v34 = vadd.f32 %v232_v17, %v231_v49  ;;  %v277_v37 = vrot.slane %v276_v23, 1 }
  0x4f   :  { %v286_v40 = vrot.slane %v285_v26, 1  ;;  %v242_v38 = vadd.f32 %v241_v27, %v240_v14  ;;  %v251_v41 = vadd.f32 %v250_v28, %v249_v57  ;;  %v260_v42 = vadd.f32 %v259_v30, %v258_v6 }
  0x50   :  { %v269_v21 = vadd.f32 %v268_v24, %v267_v20  ;;  %v377_v32 = vsel %vm376_vm0, %v233_v34, %v224_v31  ;;  %v278_v43 = vadd.f32 %v277_v37, %v276_v23  ;;  %v995_v18 = vmov 16.0  }
  0x51   :  { %v379_v44 = vsel %vm378_vm1, %v242_v38, %v377_v32  ;;  %v287_v48 = vadd.f32 %v286_v40, %v285_v26  ;;  %849 = vrcp.f32 %v995_v18  ;;  %v444_v25 = vperm.slane %v442_v22, 0 }
  0x52   :  { %v381_v29 = vsel %vm380_vm2, %v251_v41, %v379_v44  ;;  %v445_v35 = vperm.slane %v442_v22, 1 }
  0x53   :  { %v383_v39 = vsel %vm382_vm3, %v260_v42, %v381_v29 }
  0x54   :  { %v385_v50 = vsel %vm384_vm4, %v269_v21, %v383_v39 }
  0x55   :  { %v387_v51 = vsel %vm386_vm5, %v278_v43, %v385_v50 }
  0x56   :  { %v389_v62 = vsel %vm388_vm6, %v287_v48, %v387_v51 }
  0x57   :  { %v408_v15 = vmul.f32 0.03125, %v389_v62  ;;  %v850_v19 = vpop.eup %849 }
  0x58   :  { %v511_v53 = vmul.f32 16.0, %v850_v19  ;;  %vm515_vm7 = vweird.f32 %v850_v19 }
  0x59   :  { %464 = vmatmul.f32.vlgmr.msra.gmra.mxu0 %v408_v15  ;;  %487 = vmatmul.f32.vlgmr.msra.gmra.mxu1 %v408_v15 }
  0x5a   :  { %v512_v60 = vsub.f32 1.0, %v511_v53 }
  0x5c   :  { %v513_v47 = vmul.f32 %v850_v19, %v512_v60 }
  0x5e   :  { %v514_v4 = vadd.f32 %v850_v19, %v513_v47 }
  0x60   :  { %v516_v11 = vsel %vm515_vm7, %v850_v19, %v514_v4 }
  0xc2   :  { %v468_v46 = vpop.f32.mrf.mxu2  ;;  %v491_v52 = vpop.f32.mrf.mxu3 }
  0xc3   :  { %v469_v33 = vadd.f32 %v468_v46, %v444_v25  ;;  %v492_v45 = vadd.f32 %v491_v52, %v445_v35 }
  0xd6   :  { %v465_v56 = vpop.f32.mrf.mxu0  ;;  %v488_v58 = vpop.f32.mrf.mxu1 }
  0xd7   :  { %v466_v54 = vadd.f32 %v465_v56, %v444_v25  ;;  %v489_v59 = vadd.f32 %v488_v58, %v445_v35  ;;  %v494_v35 = vld [vmem:[%s1180_s3] sm:$0x3]  ;;  %s996_s3 = smov [#allocation11]  }
  0xd8   :  { %s631_s15 = sshll.u32 %s996_s3, 4  ;;  %s632_s15 = int_to_ptr.vmem [resolvable:$true] %s631_s15 }
  0xd9   :  { %v496_v61 = vadd.f32 %v469_v33, %v466_v54  ;;  %v503_v63 = vadd.f32 %v492_v45, %v489_v59 }
  0xdb   :  { %v497_v9 = vrot.slane %v496_v61, 4  ;;  %v504_v36 = vrot.slane %v503_v63, 4 }
  0xdd   :  { %v498_v0 = vadd.f32 %v497_v9, %v496_v61  ;;  %v505_v1 = vadd.f32 %v504_v36, %v503_v63 }
  0xdf   :  { %v499_v55 = vrot.slane %v498_v0, 2  ;;  %v506_v3 = vrot.slane %v505_v1, 2 }
  0xe1   :  { %v500_v5 = vadd.f32 %v499_v55, %v498_v0  ;;  %v507_v7 = vadd.f32 %v506_v3, %v505_v1 }
  0xe3   :  { %v501_v8 = vrot.slane %v500_v5, 1  ;;  %v508_v10 = vrot.slane %v507_v7, 1 }
  0xe5   :  { %v502_v12 = vadd.f32 %v501_v8, %v500_v5  ;;  %v509_v49 = vadd.f32 %v508_v10, %v507_v7 }
  0xe7   :  { %v517_v2 = vmul.f32 %v516_v11, %v502_v12  ;;  %v518_v13 = vmul.f32 %v516_v11, %v509_v49 }
  0xe9   :  { %v519_v14 = vsub.f32 %v466_v54, %v517_v2  ;;  %v521_v57 = vsub.f32 %v469_v33, %v517_v2  ;;  %v520_v6 = vsub.f32 %v489_v59, %v518_v13  ;;  %v522_v20 = vsub.f32 %v492_v45, %v518_v13  ;;  %v495_v33 = vld [vmem:[#allocation9] sm:$0x3] }
  0xea   :  { %v570_v45 = vperm.slane %v494_v35, 0  ;;  %v571_v54 = vperm.slane %v494_v35, 1  ;;  %v579_v61 = vperm.slane %v495_v33, 0  ;;  %v580_v47 = vperm.slane %v495_v33, 1 }
  0xeb   :  { %v523_v16 = vmul.f32 %v519_v14, %v519_v14  ;;  %v525_v17 = vmul.f32 %v521_v57, %v521_v57  ;;  %v524_v23 = vmul.f32 %v520_v6, %v520_v6  ;;  %v526_v26 = vmul.f32 %v522_v20, %v522_v20 }
  0xed   :  { %v527_v27 = vadd.f32 %v525_v17, %v523_v16  ;;  %v534_v28 = vadd.f32 %v526_v26, %v524_v23 }
  0xef   :  { %v528_v30 = vrot.slane %v527_v27, 4  ;;  %v535_v24 = vrot.slane %v534_v28, 4 }
  0xf1   :  { %v529_v31 = vadd.f32 %v528_v30, %v527_v27  ;;  %v536_v34 = vadd.f32 %v535_v24, %v534_v28 }
  0xf3   :  { %v530_v37 = vrot.slane %v529_v31, 2  ;;  %v537_v40 = vrot.slane %v536_v34, 2 }
  0xf5   :  { %v531_v38 = vadd.f32 %v530_v37, %v529_v31  ;;  %v538_v41 = vadd.f32 %v537_v40, %v536_v34 }
  0xf7   :  { %v532_v42 = vrot.slane %v531_v38, 1  ;;  %v539_v21 = vrot.slane %v538_v41, 1 }
  0xf9   :  { %v533_v32 = vadd.f32 %v532_v42, %v531_v38  ;;  %v540_v43 = vadd.f32 %v539_v21, %v538_v41 }
  0xfb   :  { %v541_v44 = vmul.f32 %v533_v32, %v516_v11  ;;  %v542_v48 = vmul.f32 %v540_v43, %v516_v11 }
  0xfd   :  { %v543_v29 = vadd.f32 1e-05, %v541_v44  ;;  %v544_v39 = vadd.f32 1e-05, %v542_v48 }
  0xff   :  { %851 = vrsqrt.f32 %v543_v29  ;;  %vm551_vm10 = vweird.f32 %v543_v29  ;;  %vm561_vm12 = vweird.f32 %v544_v39 }
 0x100   :  { %853 = vrsqrt.f32 %v544_v39 }
 0x105   :  { %v852_v50 = vpop.eup %851 }
 0x106   :  { %v854_v51 = vpop.eup %853  ;;  %v546_v62 = vmul.f32 %v852_v50, %v543_v29  ;;  %vm552_vm8 = vweird.f32 %v852_v50 }
 0x107   :  { %v556_v15 = vmul.f32 %v854_v51, %v544_v39  ;;  %vm562_vm9 = vweird.f32 %v854_v51  ;;  %vm553_vm11 = vmor %vm551_vm10, %vm552_vm8 }
 0x108   :  { %v547_v18 = vmul.f32 %v852_v50, %v546_v62  ;;  %vm563_vm13 = vmor %vm561_vm12, %vm562_vm9 }
 0x109   :  { %v557_v22 = vmul.f32 %v854_v51, %v556_v15 }
 0x10a   :  { %v548_v19 = vmul.f32 0.5, %v547_v18 }
 0x10b   :  { %v558_v25 = vmul.f32 0.5, %v557_v22 }
 0x10c   :  { %v549_v46 = vsub.f32 1.5, %v548_v19 }
 0x10d   :  { %v559_v52 = vsub.f32 1.5, %v558_v25 }
 0x10e   :  { %v550_v53 = vmul.f32 %v852_v50, %v549_v46 }
 0x10f   :  { %v560_v56 = vmul.f32 %v854_v51, %v559_v52 }
 0x110   :  { %v554_v58 = vsel %vm553_vm11, %v852_v50, %v550_v53 }
 0x111   :  { %v565_v59 = vmul.f32 %v554_v58, %v519_v14  ;;  %v564_v60 = vsel %vm563_vm13, %v854_v51, %v560_v56  ;;  %v567_v63 = vmul.f32 %v554_v58, %v521_v57 }
 0x112   :  { %v566_v9 = vmul.f32 %v564_v60, %v520_v6  ;;  %v568_v36 = vmul.f32 %v564_v60, %v522_v20 }
 0x113   :  { %v574_v0 = vmul.f32 %v570_v45, %v565_v59  ;;  %v576_v3 = vmul.f32 %v570_v45, %v567_v63 }
 0x114   :  { %v575_v1 = vmul.f32 %v571_v54, %v566_v9  ;;  %v577_v4 = vmul.f32 %v571_v54, %v568_v36 }
 0x115   :  { %v583_v55 = vadd.f32 %v579_v61, %v574_v0  ;;  %v585_v11 = vadd.f32 %v579_v61, %v576_v3 }
 0x116   :  { %v584_v5 = vadd.f32 %v580_v47, %v575_v1  ;;  %v586_v12 = vadd.f32 %v580_v47, %v577_v4 }
 0x117   :  { %v587_v7 = vmul.f32 %v583_v55, %v583_v55  ;;  %v589_v49 = vmul.f32 %v585_v11, %v585_v11 }
 0x118   :  { %v588_v8 = vmul.f32 %v584_v5, %v584_v5  ;;  %v590_v2 = vmul.f32 %v586_v12, %v586_v12 }
 0x11a   :  { %v591_v10 = vadd.f32 %v588_v8, %v587_v7  ;;  %v594_v13 = vadd.f32 %v590_v2, %v589_v49 }
 0x11c   :  { %592 = vadd.xlane.f32.xlu0 %v591_v10 }
 0x124   :  { %595 = vadd.xlane.f32.xlu0 %v594_v13 }
 0x18f   :  { %v593_v14 = vpop.xlane.xlu0 %592 }
 0x190   :  { %v597_v57 = vmax.f32 %v593_v14, 1e-24 }
 0x192   :  { %855 = vrsqrt.f32 %v597_v57  ;;  %vm605_vm15 = vweird.f32 %v597_v57 }
 0x197   :  { %v596_v6 = vpop.xlane.xlu0 %595 }
 0x198   :  { %v856_v20 = vpop.eup %855  ;;  %v598_v16 = vmax.f32 %v596_v6, 1e-24 }
 0x199   :  { %v600_v17 = vmul.f32 %v856_v20, %v597_v57  ;;  %vm606_vm14 = vweird.f32 %v856_v20 }
 0x19a   :  { %857 = vrsqrt.f32 %v598_v16  ;;  %vm607_vm0 = vmor %vm605_vm15, %vm606_vm14  ;;  %vm615_vm2 = vweird.f32 %v598_v16 }
 0x19b   :  { %v601_v23 = vmul.f32 %v856_v20, %v600_v17 }
 0x19d   :  { %v602_v26 = vmul.f32 0.5, %v601_v23 }
 0x19f   :  { %v603_v27 = vsub.f32 1.5, %v602_v26 }
 0x1a0   :  { %v858_v28 = vpop.eup %857 }
 0x1a1   :  { %v604_v30 = vmul.f32 %v856_v20, %v603_v27  ;;  %v610_v24 = vmul.f32 %v858_v28, %v598_v16  ;;  %vm616_vm1 = vweird.f32 %v858_v28 }
 0x1a2   :  { %vm617_vm3 = vmor %vm615_vm2, %vm616_vm1 }
 0x1a3   :  { %v608_v31 = vsel %vm607_vm0, %v856_v20, %v604_v30  ;;  %v611_v34 = vmul.f32 %v858_v28, %v610_v24 }
 0x1a4   :  { %v619_v37 = vmul.f32 %v608_v31, %v583_v55  ;;  %v620_v40 = vmul.f32 %v608_v31, %v584_v5 }
 0x1a5   :  { %v612_v38 = vmul.f32 0.5, %v611_v34 }
 0x1a6   :  { %623 = vst [vmem:[#allocation11] sm:$0xff] %v619_v37 }
 0x1a7   :  { %624 = vst [vmem:[#allocation11 + $0x8] sm:$0xff] %v620_v40  ;;  %v613_v41 = vsub.f32 1.5, %v612_v38 }
 0x1a9   :  { %v614_v42 = vmul.f32 %v858_v28, %v613_v41 }
 0x1ab   :  { %v618_v21 = vsel %vm617_vm3, %v858_v28, %v614_v42 }
 0x1ac   :  { %v621_v32 = vmul.f32 %v618_v21, %v585_v11  ;;  %v622_v43 = vmul.f32 %v618_v21, %v586_v12 }
 0x1ae   :  { %625 = vst [vmem:[#allocation11 + $0x10] sm:$0xff] %v621_v32 }
 0x1af   :  { %626 = vst [vmem:[#allocation11 + $0x18] sm:$0xff] %v622_v43 }
 0x1b0   :  { %639 = dma.vmem_to_hbm [thread:$0]  %s632_s15, 512, %s634_s18, [#allocation5], %s988_s26, %s988_s26, %s989_s27  }
 0x1b1   :  { %985 = dma.done.wait [#allocation5], 512  }
 0x1b2   :  { %986 = vsyncadd [#allocation5], 4294966784 }
 0x1b3   :  { %644 = vsyncpa [#allocation4], 1 }
 0x1b4   :  { %645 = vsyncpa [#allocation7], 1 }
 0x1b5   :  { %646 = vsyncpa [#allocation10], 1 }
 0x1b6   :  { %647 = vsyncpa [#allocation5], 1 }

// kernel: tpu_custom_call.1
= control target key start
LH: loop header
LB: loop body
LE: loop exit
PB: predicated region body
PF: predicated region fallthrough
CT: control target
= control target key end

     0   :  { %10 = vsyncpa [#allocation4], 0  ;;  %s1177_s0 = inlined_call_operand.hbm [shape: bf16[16,32,128], index: 0, kind: input, shape index: {}]   ;;  %s1178_s1 = inlined_call_operand.hbm [shape: f32[128,256], index: 1, kind: input, shape index: {}]   ;;  %s1179_s2 = inlined_call_operand.hbm [shape: f32[1,256], index: 2, kind: input, shape index: {}]   ;;  %s1180_s3 = inlined_call_operand.vmem [shape: f32[1,256], index: 3, kind: input, shape index: {}]   ;;  %s1181_s4 = inlined_call_operand.hbm [shape: f32[1,256], index: 4, kind: input, shape index: {}]   ;;  %s1182_s5 = inlined_call_operand.hbm [shape: f32[16,256], index: 5, kind: output, shape index: {}]  }
   0x1   :  { %11 = vsyncpa [#allocation7], 0 }
   0x2   :  { %12 = vsyncpa [#allocation10], 0  ;;  %s31_s20 = sshll.u32 %s1178_s1, 4  ;;  %s32_s20 = int_to_ptr.hbm [resolvable:$true] %s31_s20 }
   0x3   :  { %13 = vsyncpa [#allocation5], 0  ;;  %s987_s21 = smov [#allocation6]   ;;  %s18_s25 = sshll.u32 %s1177_s0, 4  ;;  %s19_s25 = int_to_ptr.hbm [resolvable:$true] %s18_s25 }
   0x4   :  { %s33_s22 = sshll.u32 %s987_s21, 4  ;;  %s988_s26 = smov 256   ;;  %s34_s22 = int_to_ptr.vmem [resolvable:$true] %s33_s22 }
   0x5   :  { %s989_s27 = smov 16   ;;  %s990_s28 = smov [#allocation3]  }
   0x6   :  { %39 = dma.hbm_to_vmem [thread:$0]  %s32_s20, 4096, %s34_s22, [#allocation7], %s988_s26, %s988_s26, %s989_s27  }
   0x7   :  { %s20_s29 = sshll.u32 %s990_s28, 4  ;;  %s991_s1 = smov 64   ;;  %s21_s29 = int_to_ptr.vmem [resolvable:$true] %s20_s29 }
   0x8   :  { %s992_s30 = smov 4   ;;  %s45_s8 = sshll.u32 %s1179_s2, 4  ;;  %s46_s8 = int_to_ptr.hbm [resolvable:$true] %s45_s8 }
   0x9   :  { %26 = dma.hbm_to_vmem [thread:$0]  %s19_s25, 4096, %s21_s29, [#allocation4], %s991_s1, %s991_s1, %s992_s30  }
   0xa   :  { %s993_s9 = smov [#allocation8]   ;;  %s58_s12 = sshll.u32 %s1181_s4, 4  ;;  %s59_s12 = int_to_ptr.hbm [resolvable:$true] %s58_s12 }
   0xb   :  { %s47_s0 = sshll.u32 %s993_s9, 4  ;;  %s994_s13 = smov [#allocation9]   ;;  %s48_s0 = int_to_ptr.vmem [resolvable:$true] %s47_s0 }
   0xc   :  { %50 = dma.hbm_to_vmem [thread:$0]  %s46_s8, 32, %s48_s0, [#allocation7]  }
   0xd   :  { %s60_s14 = sshll.u32 %s994_s13, 4  ;;  %s61_s14 = int_to_ptr.vmem [resolvable:$true] %s60_s14 }
   0xe   :  { %63 = dma.hbm_to_vmem [thread:$0]  %s59_s12, 32, %s61_s14, [#allocation10]  }
   0xf   :  { %979 = dma.done.wait [#allocation4], 4096  }
  0x10   :  { %980 = vsyncadd [#allocation4], 4294963200 }
  0x11   :  { %981 = dma.done.wait [#allocation7], 4128  }
  0x12   :  { %982 = vsyncadd [#allocation7], 4294963168 }
  0x13   :  { %983 = dma.done.wait [#allocation10], 32  }
  0x14   :  { %984 = vsyncadd [#allocation10], 4294967264  ;;  %v440_v0 = vld [vmem:[#allocation6 + $0xf0] sm:$0xff]  ;;  %v441_v1 = vld [vmem:[#allocation6 + $0xf8] sm:$0xff]  ;;  %vm376_vm0 = vcmask 1041409   ;;  %vm378_vm1 = vcmask 1042434  }
  0x15   :  { %v438_v2 = vld [vmem:[#allocation6 + $0xe0] sm:$0xff]  ;;  %807 = vmatpush.msra.mxu2 %v440_v0  ;;  %823 = vmatpush.msra.mxu3 %v441_v1  ;;  %v439_v3 = vld [vmem:[#allocation6 + $0xe8] sm:$0xff]  ;;  %v436_v4 = vld [vmem:[#allocation6 + $0xd0] sm:$0xff]  ;;  %vm380_vm2 = vcmask 1043459   ;;  %vm382_vm3 = vcmask 1044484   ;;  %vm384_vm4 = vcmask 1045509  }
  0x16   :  { %v437_v5 = vld [vmem:[#allocation6 + $0xd8] sm:$0xff]  ;;  %448 = vmatpush.msra.mxu0 %v440_v0  ;;  %471 = vmatpush.msra.mxu1 %v441_v1  ;;  %v434_v6 = vld [vmem:[#allocation6 + $0xc0] sm:$0xff]  ;;  %v435_v7 = vld [vmem:[#allocation6 + $0xc8] sm:$0xff]  ;;  %vm386_vm5 = vcmask 1046534   ;;  %vm388_vm6 = vcmask 1047559   ;;  %s633_s18 = sshll.u32 %s1182_s5, 4  ;;  %s634_s18 = int_to_ptr.hbm [resolvable:$true] %s633_s18 }
  0x17   :  { %808 = vmatpush.msra.mxu2 %v438_v2  ;;  %824 = vmatpush.msra.mxu3 %v439_v3  ;;  %v432_v8 = vld [vmem:[#allocation6 + $0xb0] sm:$0xff]  ;;  %v433_v9 = vld [vmem:[#allocation6 + $0xb8] sm:$0xff]  ;;  %v430_v10 = vld [vmem:[#allocation6 + $0xa0] sm:$0xff] }
  0x18   :  { %449 = vmatpush.msra.mxu0 %v438_v2  ;;  %472 = vmatpush.msra.mxu1 %v439_v3  ;;  %v431_v11 = vld [vmem:[#allocation6 + $0xa8] sm:$0xff]  ;;  %v428_v12 = vld [vmem:[#allocation6 + $0x90] sm:$0xff]  ;;  %v429_v13 = vld [vmem:[#allocation6 + $0x98] sm:$0xff] }
  0x19   :  { %809 = vmatpush.msra.mxu2 %v436_v4  ;;  %825 = vmatpush.msra.mxu3 %v437_v5  ;;  %v426_v14 = vld [vmem:[#allocation6 + $0x80] sm:$0xff]  ;;  %v427_v15 = vld [vmem:[#allocation6 + $0x88] sm:$0xff]  ;;  %v1048_v20 = vld [vmem:[#allocation3 + $0x90] sm:$0xff]  }
  0x1a   :  { %450 = vmatpush.msra.mxu0 %v436_v4  ;;  %473 = vmatpush.msra.mxu1 %v437_v5  ;;  %v1042_v16 = vld [vmem:[#allocation3 + $0x80] sm:$0xff]   ;;  %v1046_v19 = vld [vmem:[#allocation3 + $0x88] sm:$0xff]   ;;  %v1050_v21 = vld [vmem:[#allocation3 + $0x98] sm:$0xff]   ;;  %v722_v26 = vunpack.c.l.bf16 %v1048_v20  ;;  %v723_v27 = vunpack.c.h.bf16 %v1048_v20 }
  0x1b   :  { %810 = vmatpush.msra.mxu2 %v434_v6  ;;  %826 = vmatpush.msra.mxu3 %v435_v7  ;;  %v714_v17 = vunpack.c.l.bf16 %v1042_v16  ;;  %v715_v18 = vunpack.c.h.bf16 %v1042_v16  ;;  %v424_v22 = vld [vmem:[#allocation6 + $0x70] sm:$0xff]  ;;  %v425_v23 = vld [vmem:[#allocation6 + $0x78] sm:$0xff]  ;;  %v718_v24 = vunpack.c.l.bf16 %v1046_v19  ;;  %v719_v25 = vunpack.c.h.bf16 %v1046_v19  ;;  %v1056_v28 = vld [vmem:[#allocation3 + $0xa0] sm:$0xff]  }
  0x1c   :  { %451 = vmatpush.msra.mxu0 %v434_v6  ;;  %474 = vmatpush.msra.mxu1 %v435_v7  ;;  %v1058_v29 = vld [vmem:[#allocation3 + $0xa8] sm:$0xff]   ;;  %v1060_v30 = vld [vmem:[#allocation3 + $0xb0] sm:$0xff]   ;;  %v726_v31 = vunpack.c.l.bf16 %v1050_v21  ;;  %v727_v32 = vunpack.c.h.bf16 %v1050_v21  ;;  %v730_v33 = vunpack.c.l.bf16 %v1056_v28  ;;  %v731_v34 = vunpack.c.h.bf16 %v1056_v28  ;;  %v1066_v35 = vld [vmem:[#allocation3 + $0xb8] sm:$0xff]  }
  0x1d   :  { %811 = vmatpush.msra.mxu2 %v432_v8  ;;  %827 = vmatpush.msra.mxu3 %v433_v9  ;;  %v799_v36 = vld [vmem:[#allocation3 + $0xc0] sm:$0xff]   ;;  %v1068_v37 = vld [vmem:[#allocation3 + $0xc8] sm:$0xff]   ;;  %v734_v38 = vunpack.c.l.bf16 %v1058_v29  ;;  %v735_v39 = vunpack.c.h.bf16 %v1058_v29  ;;  %v738_v40 = vunpack.c.l.bf16 %v1060_v30  ;;  %v739_v41 = vunpack.c.h.bf16 %v1060_v30  ;;  %v801_v42 = vld [vmem:[#allocation3 + $0xd0] sm:$0xff]  }
  0x1e   :  { %452 = vmatpush.msra.mxu0 %v432_v8  ;;  %475 = vmatpush.msra.mxu1 %v433_v9  ;;  %v1074_v43 = vld [vmem:[#allocation3 + $0xd8] sm:$0xff]   ;;  %v1076_v44 = vld [vmem:[#allocation3 + $0xe0] sm:$0xff]   ;;  %v742_v45 = vunpack.c.l.bf16 %v1066_v35  ;;  %v743_v46 = vunpack.c.h.bf16 %v1066_v35  ;;  %v746_v47 = vunpack.c.l.bf16 %v799_v36  ;;  %v747_v48 = vunpack.c.h.bf16 %v799_v36  ;;  %v1080_v49 = vld [vmem:[#allocation3 + $0xe8] sm:$0xff]  }
  0x1f   :  { %812 = vmatpush.msra.mxu2 %v430_v10  ;;  %828 = vmatpush.msra.mxu3 %v431_v11  ;;  %v1082_v50 = vld [vmem:[#allocation3 + $0xf0] sm:$0xff]   ;;  %v422_v51 = vld [vmem:[#allocation6 + $0x60] sm:$0xff]  ;;  %v423_v52 = vld [vmem:[#allocation6 + $0x68] sm:$0xff]  ;;  %v750_v53 = vunpack.c.l.bf16 %v1068_v37  ;;  %v751_v54 = vunpack.c.h.bf16 %v1068_v37  ;;  %v754_v55 = vunpack.c.l.bf16 %v801_v42  ;;  %v755_v56 = vunpack.c.h.bf16 %v801_v42 }
  0x20   :  { %453 = vmatpush.msra.mxu0 %v430_v10  ;;  %476 = vmatpush.msra.mxu1 %v431_v11  ;;  %v1086_v57 = vld [vmem:[#allocation3 + $0xf8] sm:$0xff]   ;;  %v758_v58 = vunpack.c.l.bf16 %v1074_v43  ;;  %v759_v59 = vunpack.c.h.bf16 %v1074_v43  ;;  %v762_v60 = vunpack.c.l.bf16 %v1076_v44  ;;  %v763_v61 = vunpack.c.h.bf16 %v1076_v44  ;;  %v1092_v62 = vld [vmem:[#allocation3] sm:$0xff]   ;;  %v420_v63 = vld [vmem:[#allocation6 + $0x50] sm:$0xff] }
  0x21   :  { %813 = vmatpush.msra.mxu2 %v428_v12  ;;  %829 = vmatpush.msra.mxu3 %v429_v13  ;;  %v421_v0 = vld [vmem:[#allocation6 + $0x58] sm:$0xff]  ;;  %v766_v1 = vunpack.c.l.bf16 %v1080_v49  ;;  %v767_v2 = vunpack.c.h.bf16 %v1080_v49  ;;  %v770_v3 = vunpack.c.l.bf16 %v1082_v50  ;;  %v771_v4 = vunpack.c.h.bf16 %v1082_v50  ;;  %v1104_v9 = vld [vmem:[#allocation3 + $0x8] sm:$0xff]   ;;  %v418_v10 = vld [vmem:[#allocation6 + $0x40] sm:$0xff] }
  0x22   :  { %454 = vmatpush.msra.mxu0 %v428_v12  ;;  %477 = vmatpush.msra.mxu1 %v429_v13  ;;  %v774_v5 = vunpack.c.l.bf16 %v1086_v57  ;;  %v775_v6 = vunpack.c.h.bf16 %v1086_v57  ;;  %v288_v7 = vadd.f32 %v715_v18, %v714_v17  ;;  %v297_v8 = vadd.f32 %v723_v27, %v722_v26  ;;  %v419_v11 = vld [vmem:[#allocation6 + $0x48] sm:$0xff]  ;;  %v417_v26 = vld [vmem:[#allocation6 + $0x38] sm:$0xff]  ;;  %v414_v37 = vld [vmem:[#allocation6 + $0x20] sm:$0xff] }
  0x23   :  { %814 = vmatpush.msra.mxu2 %v426_v14  ;;  %830 = vmatpush.msra.mxu3 %v427_v15  ;;  %v306_v12 = vadd.f32 %v731_v34, %v730_v33  ;;  %v315_v13 = vadd.f32 %v739_v41, %v738_v40  ;;  %v333_v17 = vadd.f32 %v755_v56, %v754_v55  ;;  %v651_v18 = vunpack.c.h.bf16 %v1092_v62  ;;  %v415_v40 = vld [vmem:[#allocation6 + $0x28] sm:$0xff]  ;;  %v412_v44 = vld [vmem:[#allocation6 + $0x10] sm:$0xff] }
  0x24   :  { %455 = vmatpush.msra.mxu0 %v426_v14  ;;  %478 = vmatpush.msra.mxu1 %v427_v15  ;;  %v324_v14 = vadd.f32 %v747_v48, %v746_v47  ;;  %v650_v15 = vunpack.c.l.bf16 %v1092_v62  ;;  %v289_v20 = vadd.f32 %v718_v24, %v288_v7  ;;  %v298_v16 = vadd.f32 %v726_v31, %v297_v8 }
  0x25   :  { %815 = vmatpush.msra.mxu2 %v424_v22  ;;  %831 = vmatpush.msra.mxu3 %v425_v23  ;;  %v307_v27 = vadd.f32 %v734_v38, %v306_v12  ;;  %v316_v28 = vadd.f32 %v742_v45, %v315_v13  ;;  %v654_v33 = vunpack.c.l.bf16 %v1104_v9  ;;  %v334_v34 = vadd.f32 %v758_v58, %v333_v17  ;;  %v413_v45 = vld [vmem:[#allocation6 + $0x18] sm:$0xff] }
  0x26   :  { %456 = vmatpush.msra.mxu0 %v424_v22  ;;  %479 = vmatpush.msra.mxu1 %v425_v23  ;;  %v1112_v22 = vld [vmem:[#allocation3 + $0x10] sm:$0xff]   ;;  %v325_v30 = vadd.f32 %v750_v53, %v324_v14  ;;  %v290_v24 = vadd.f32 %v719_v25, %v289_v20  ;;  %v299_v31 = vadd.f32 %v727_v32, %v298_v16  ;;  %v655_v36 = vunpack.c.h.bf16 %v1104_v9  ;;  %v411_v53 = vld [vmem:[#allocation6 + $0x8] sm:$0xff] }
  0x27   :  { %816 = vmatpush.msra.mxu2 %v422_v51  ;;  %832 = vmatpush.msra.mxu3 %v423_v52  ;;  %v416_v23 = vld [vmem:[#allocation6 + $0x30] sm:$0xff]  ;;  %v308_v38 = vadd.f32 %v735_v39, %v307_v27  ;;  %v317_v41 = vadd.f32 %v743_v46, %v316_v28  ;;  %v658_v19 = vunpack.c.l.bf16 %v1112_v22  ;;  %v335_v32 = vadd.f32 %v759_v59, %v334_v34 }
  0x28   :  { %457 = vmatpush.msra.mxu0 %v422_v51  ;;  %480 = vmatpush.msra.mxu1 %v423_v52  ;;  %v326_v42 = vadd.f32 %v751_v54, %v325_v30  ;;  %v291_v21 = vrot.slane %v290_v24, 4  ;;  %v300_v25 = vrot.slane %v299_v31, 4  ;;  %v342_v43 = vadd.f32 %v763_v61, %v762_v60  ;;  %v410_v52 = vld [vmem:[#allocation6] sm:$0xff] }
  0x29   :  { %817 = vmatpush.msra.mxu2 %v420_v63  ;;  %833 = vmatpush.msra.mxu3 %v421_v0  ;;  %v309_v47 = vrot.slane %v308_v38, 4  ;;  %v318_v48 = vrot.slane %v317_v41, 4  ;;  %v351_v39 = vadd.f32 %v771_v4, %v770_v3  ;;  %v336_v50 = vrot.slane %v335_v32, 4 }
  0x2a   :  { %458 = vmatpush.msra.mxu0 %v420_v63  ;;  %481 = vmatpush.msra.mxu1 %v421_v0  ;;  %v327_v29 = vrot.slane %v326_v42, 4  ;;  %v292_v35 = vadd.f32 %v291_v21, %v290_v24  ;;  %v301_v46 = vadd.f32 %v300_v25, %v299_v31  ;;  %v343_v51 = vadd.f32 %v766_v1, %v342_v43  ;;  %v1135_v24 = vld [vmem:[#allocation3 + $0x18] sm:$0xff]  }
  0x2b   :  { %818 = vmatpush.msra.mxu2 %v418_v10  ;;  %834 = vmatpush.msra.mxu3 %v419_v11  ;;  %v310_v54 = vadd.f32 %v309_v47, %v308_v38  ;;  %v319_v55 = vadd.f32 %v318_v48, %v317_v41  ;;  %v352_v58 = vadd.f32 %v774_v5, %v351_v39  ;;  %v779_v38 = vld [vmem:[#allocation3 + $0x20] sm:$0xff]   ;;  %v659_v25 = vunpack.c.h.bf16 %v1112_v22  ;;  %v781_v48 = vld [vmem:[#allocation3 + $0x30] sm:$0xff]  }
  0x2c   :  { %459 = vmatpush.msra.mxu0 %v418_v10  ;;  %482 = vmatpush.msra.mxu1 %v419_v11  ;;  %v328_v56 = vadd.f32 %v327_v29, %v326_v42  ;;  %v293_v59 = vrot.slane %v292_v35, 2  ;;  %v302_v60 = vrot.slane %v301_v46, 2  ;;  %v337_v61 = vadd.f32 %v336_v50, %v335_v32  ;;  %v1139_v32 = vld [vmem:[#allocation3 + $0x28] sm:$0xff]   ;;  %v782_v50 = vld [vmem:[#allocation3 + $0x38] sm:$0xff]  }
  0x2d   :  { %819 = vmatpush.msra.mxu2 %v416_v23  ;;  %835 = vmatpush.msra.mxu3 %v417_v26  ;;  %v344_v63 = vadd.f32 %v767_v2, %v343_v51  ;;  %v311_v0 = vrot.slane %v310_v54, 2  ;;  %v320_v1 = vrot.slane %v319_v55, 2  ;;  %v353_v4 = vadd.f32 %v775_v6, %v352_v58  ;;  %v783_v51 = vld [vmem:[#allocation3 + $0x40] sm:$0xff]  }
  0x2e   :  { %460 = vmatpush.msra.mxu0 %v416_v23  ;;  %483 = vmatpush.msra.mxu1 %v417_v26  ;;  %v329_v3 = vrot.slane %v328_v56, 2  ;;  %v294_v5 = vadd.f32 %v293_v59, %v292_v35  ;;  %v303_v7 = vadd.f32 %v302_v60, %v301_v46  ;;  %v338_v8 = vrot.slane %v337_v61, 2 }
  0x2f   :  { %820 = vmatpush.msra.mxu2 %v414_v37  ;;  %836 = vmatpush.msra.mxu3 %v415_v40  ;;  %v345_v10 = vrot.slane %v344_v63, 4  ;;  %v312_v11 = vadd.f32 %v311_v0, %v310_v54  ;;  %v321_v12 = vadd.f32 %v320_v1, %v319_v55  ;;  %v354_v2 = vrot.slane %v353_v4, 4  ;;  %v786_v0 = vld [vmem:[#allocation3 + $0x58] sm:$0xff]  }
  0x30   :  { %461 = vmatpush.msra.mxu0 %v414_v37  ;;  %484 = vmatpush.msra.mxu1 %v415_v40  ;;  %v330_v49 = vadd.f32 %v329_v3, %v328_v56  ;;  %v295_v13 = vrot.slane %v294_v5, 1  ;;  %v304_v14 = vrot.slane %v303_v7, 1  ;;  %v339_v57 = vadd.f32 %v338_v8, %v337_v61  ;;  %v784_v56 = vld [vmem:[#allocation3 + $0x48] sm:$0xff]  }
  0x31   :  { %821 = vmatpush.msra.mxu2 %v412_v44  ;;  %837 = vmatpush.msra.mxu3 %v413_v45  ;;  %v346_v6 = vadd.f32 %v345_v10, %v344_v63  ;;  %v313_v20 = vrot.slane %v312_v11, 1  ;;  %v322_v16 = vrot.slane %v321_v12, 1  ;;  %v355_v23 = vadd.f32 %v354_v2, %v353_v4  ;;  %v785_v63 = vld [vmem:[#allocation3 + $0x50] sm:$0xff]  }
  0x32   :  { %462 = vmatpush.msra.mxu0 %v412_v44  ;;  %485 = vmatpush.msra.mxu1 %v413_v45  ;;  %v331_v17 = vrot.slane %v330_v49, 1  ;;  %v296_v26 = vadd.f32 %v295_v13, %v294_v5  ;;  %v305_v27 = vadd.f32 %v304_v14, %v303_v7  ;;  %v340_v28 = vrot.slane %v339_v57, 1  ;;  %v787_v7 = vld [vmem:[#allocation3 + $0x60] sm:$0xff]   ;;  %v789_v2 = vld [vmem:[#allocation3 + $0x70] sm:$0xff]  }
  0x33   :  { %822 = vmatpush.msra.mxu2 %v410_v52  ;;  %838 = vmatpush.msra.mxu3 %v411_v53  ;;  %v347_v30 = vrot.slane %v346_v6, 2  ;;  %v314_v31 = vadd.f32 %v313_v20, %v312_v11  ;;  %v323_v34 = vadd.f32 %v322_v16, %v321_v12  ;;  %v356_v40 = vrot.slane %v355_v23, 2  ;;  %v790_v20 = vld [vmem:[#allocation3 + $0x78] sm:$0xff]  }
  0x34   :  { %463 = vmatpush.msra.mxu0 %v410_v52  ;;  %486 = vmatpush.msra.mxu1 %v411_v53  ;;  %v332_v37 = vadd.f32 %v331_v17, %v330_v49  ;;  %v341_v41 = vadd.f32 %v340_v28, %v339_v57  ;;  %v390_v21 = vsel %vm376_vm0, %v305_v27, %v296_v26  ;;  %v662_v45 = vunpack.c.l.bf16 %v1135_v24  ;;  %v788_v49 = vld [vmem:[#allocation3 + $0x68] sm:$0xff]  }
  0x35   :  { %v348_v42 = vadd.f32 %v347_v30, %v346_v6  ;;  %v357_v43 = vadd.f32 %v356_v40, %v355_v23  ;;  %v391_v44 = vsel %vm378_vm1, %v314_v31, %v390_v21  ;;  %v663_v47 = vunpack.c.h.bf16 %v1135_v24 }
  0x36   :  { %v392_v39 = vsel %vm380_vm2, %v323_v34, %v391_v44  ;;  %v666_v35 = vunpack.c.l.bf16 %v779_v38  ;;  %v667_v46 = vunpack.c.h.bf16 %v779_v38  ;;  %v670_v54 = vunpack.c.l.bf16 %v1139_v32 }
  0x37   :  { %v349_v29 = vrot.slane %v348_v42, 1  ;;  %v358_v52 = vrot.slane %v357_v43, 1  ;;  %v393_v53 = vsel %vm382_vm3, %v332_v37, %v392_v39  ;;  %v671_v55 = vunpack.c.h.bf16 %v1139_v32 }
  0x38   :  { %v394_v59 = vsel %vm384_vm4, %v341_v41, %v393_v53  ;;  %v674_v60 = vunpack.c.l.bf16 %v781_v48  ;;  %v675_v61 = vunpack.c.h.bf16 %v781_v48  ;;  %v678_v3 = vunpack.c.l.bf16 %v782_v50 }
  0x39   :  { %v350_v58 = vadd.f32 %v349_v29, %v348_v42  ;;  %v359_v1 = vadd.f32 %v358_v52, %v357_v43  ;;  %v679_v4 = vunpack.c.h.bf16 %v782_v50  ;;  %v682_v5 = vunpack.c.l.bf16 %v783_v51 }
  0x3a   :  { %v683_v10 = vunpack.c.h.bf16 %v783_v51  ;;  %v686_v11 = vunpack.c.l.bf16 %v784_v56  ;;  %v687_v12 = vunpack.c.h.bf16 %v784_v56  ;;  %v690_v14 = vunpack.c.l.bf16 %v785_v63 }
  0x3b   :  { %v395_v8 = vsel %vm386_vm5, %v350_v58, %v394_v59  ;;  %v691_v57 = vunpack.c.h.bf16 %v785_v63  ;;  %v694_v6 = vunpack.c.l.bf16 %v786_v0  ;;  %v695_v17 = vunpack.c.h.bf16 %v786_v0 }
  0x3c   :  { %v396_v13 = vsel %vm388_vm6, %v359_v1, %v395_v8  ;;  %v698_v23 = vunpack.c.l.bf16 %v787_v7  ;;  %v699_v26 = vunpack.c.h.bf16 %v787_v7  ;;  %v702_v27 = vunpack.c.l.bf16 %v788_v49 }
  0x3d   :  { %v409_v16 = vmul.f32 0.03125, %v396_v13  ;;  %v703_v28 = vunpack.c.h.bf16 %v788_v49  ;;  %v706_v30 = vunpack.c.l.bf16 %v789_v2  ;;  %v707_v24 = vunpack.c.h.bf16 %v789_v2 }
  0x3e   :  { %v710_v31 = vunpack.c.l.bf16 %v790_v20  ;;  %v711_v34 = vunpack.c.h.bf16 %v790_v20  ;;  %v216_v37 = vadd.f32 %v651_v18, %v650_v15  ;;  %v225_v40 = vadd.f32 %v659_v25, %v658_v19 }
  0x3f   :  { %467 = vmatmul.f32.vlgmr.msra.gmra.mxu2 %v409_v16  ;;  %490 = vmatmul.f32.vlgmr.msra.gmra.mxu3 %v409_v16  ;;  %v234_v38 = vadd.f32 %v667_v46, %v666_v35  ;;  %v243_v41 = vadd.f32 %v675_v61, %v674_v60  ;;  %v252_v42 = vadd.f32 %v683_v10, %v682_v5 }
  0x40   :  { %v261_v21 = vadd.f32 %v691_v57, %v690_v14  ;;  %v217_v32 = vadd.f32 %v654_v33, %v216_v37  ;;  %v226_v43 = vadd.f32 %v662_v45, %v225_v40  ;;  %v270_v44 = vadd.f32 %v699_v26, %v698_v23 }
  0x41   :  { %v279_v48 = vadd.f32 %v707_v24, %v706_v30  ;;  %v235_v29 = vadd.f32 %v670_v54, %v234_v38  ;;  %v244_v39 = vadd.f32 %v678_v3, %v243_v41  ;;  %v253_v50 = vadd.f32 %v686_v11, %v252_v42 }
  0x42   :  { %v262_v51 = vadd.f32 %v694_v6, %v261_v21  ;;  %v218_v62 = vadd.f32 %v655_v36, %v217_v32  ;;  %v227_v15 = vadd.f32 %v663_v47, %v226_v43  ;;  %v271_v18 = vadd.f32 %v702_v27, %v270_v44 }
  0x43   :  { %v280_v22 = vadd.f32 %v710_v31, %v279_v48  ;;  %v236_v19 = vadd.f32 %v671_v55, %v235_v29  ;;  %v245_v25 = vadd.f32 %v679_v4, %v244_v39  ;;  %v254_v35 = vadd.f32 %v687_v12, %v253_v50 }
  0x44   :  { %v263_v46 = vadd.f32 %v695_v17, %v262_v51  ;;  %v219_v52 = vrot.slane %v218_v62, 4  ;;  %v228_v53 = vrot.slane %v227_v15, 4  ;;  %v272_v33 = vadd.f32 %v703_v28, %v271_v18 }
  0x45   :  { %v281_v45 = vadd.f32 %v711_v34, %v280_v22  ;;  %v237_v56 = vrot.slane %v236_v19, 4  ;;  %v246_v58 = vrot.slane %v245_v25, 4  ;;  %v255_v54 = vrot.slane %v254_v35, 4  ;;  %v442_v22 = vld [vmem:[#allocation8] sm:$0x3] }
  0x46   :  { %v264_v59 = vrot.slane %v263_v46, 4  ;;  %v220_v60 = vadd.f32 %v219_v52, %v218_v62  ;;  %v229_v61 = vadd.f32 %v228_v53, %v227_v15  ;;  %v273_v63 = vrot.slane %v272_v33, 4 }
  0x47   :  { %v282_v9 = vrot.slane %v281_v45, 4  ;;  %v238_v36 = vadd.f32 %v237_v56, %v236_v19  ;;  %v247_v47 = vadd.f32 %v246_v58, %v245_v25  ;;  %v256_v0 = vadd.f32 %v255_v54, %v254_v35 }
  0x48   :  { %v265_v1 = vadd.f32 %v264_v59, %v263_v46  ;;  %v221_v55 = vrot.slane %v220_v60, 2  ;;  %v230_v3 = vrot.slane %v229_v61, 2  ;;  %v274_v4 = vadd.f32 %v273_v63, %v272_v33 }
  0x49   :  { %v283_v5 = vadd.f32 %v282_v9, %v281_v45  ;;  %v239_v7 = vrot.slane %v238_v36, 2  ;;  %v248_v8 = vrot.slane %v247_v47, 2  ;;  %v257_v10 = vrot.slane %v256_v0, 2 }
  0x4a   :  { %v266_v11 = vrot.slane %v265_v1, 2  ;;  %v222_v12 = vadd.f32 %v221_v55, %v220_v60  ;;  %v231_v49 = vadd.f32 %v230_v3, %v229_v61  ;;  %v275_v2 = vrot.slane %v274_v4, 2 }
  0x4b   :  { %v284_v13 = vrot.slane %v283_v5, 2  ;;  %v240_v14 = vadd.f32 %v239_v7, %v238_v36  ;;  %v249_v57 = vadd.f32 %v248_v8, %v247_v47  ;;  %v258_v6 = vadd.f32 %v257_v10, %v256_v0 }
  0x4c   :  { %v267_v20 = vadd.f32 %v266_v11, %v265_v1  ;;  %v223_v16 = vrot.slane %v222_v12, 1  ;;  %v232_v17 = vrot.slane %v231_v49, 1  ;;  %v276_v23 = vadd.f32 %v275_v2, %v274_v4 }
  0x4d   :  { %v285_v26 = vadd.f32 %v284_v13, %v283_v5  ;;  %v241_v27 = vrot.slane %v240_v14, 1  ;;  %v250_v28 = vrot.slane %v249_v57, 1  ;;  %v259_v30 = vrot.slane %v258_v6, 1 }
  0x4e   :  { %v268_v24 = vrot.slane %v267_v20, 1  ;;  %v224_v31 = vadd.f32 %v223_v16, %v222_v12  ;;  %v233_v34 = vadd.f32 %v232_v17, %v231_v49  ;;  %v277_v37 = vrot.slane %v276_v23, 1 }
  0x4f   :  { %v286_v40 = vrot.slane %v285_v26, 1  ;;  %v242_v38 = vadd.f32 %v241_v27, %v240_v14  ;;  %v251_v41 = vadd.f32 %v250_v28, %v249_v57  ;;  %v260_v42 = vadd.f32 %v259_v30, %v258_v6 }
  0x50   :  { %v269_v21 = vadd.f32 %v268_v24, %v267_v20  ;;  %v377_v32 = vsel %vm376_vm0, %v233_v34, %v224_v31  ;;  %v278_v43 = vadd.f32 %v277_v37, %v276_v23  ;;  %v995_v18 = vmov 16.0  }
  0x51   :  { %v379_v44 = vsel %vm378_vm1, %v242_v38, %v377_v32  ;;  %v287_v48 = vadd.f32 %v286_v40, %v285_v26  ;;  %849 = vrcp.f32 %v995_v18  ;;  %v444_v25 = vperm.slane %v442_v22, 0 }
  0x52   :  { %v381_v29 = vsel %vm380_vm2, %v251_v41, %v379_v44  ;;  %v445_v35 = vperm.slane %v442_v22, 1 }
  0x53   :  { %v383_v39 = vsel %vm382_vm3, %v260_v42, %v381_v29 }
  0x54   :  { %v385_v50 = vsel %vm384_vm4, %v269_v21, %v383_v39 }
  0x55   :  { %v387_v51 = vsel %vm386_vm5, %v278_v43, %v385_v50 }
  0x56   :  { %v389_v62 = vsel %vm388_vm6, %v287_v48, %v387_v51 }
  0x57   :  { %v408_v15 = vmul.f32 0.03125, %v389_v62  ;;  %v850_v19 = vpop.eup %849 }
  0x58   :  { %v511_v53 = vmul.f32 16.0, %v850_v19  ;;  %vm515_vm7 = vweird.f32 %v850_v19 }
  0x59   :  { %464 = vmatmul.f32.vlgmr.msra.gmra.mxu0 %v408_v15  ;;  %487 = vmatmul.f32.vlgmr.msra.gmra.mxu1 %v408_v15 }
  0x5a   :  { %v512_v60 = vsub.f32 1.0, %v511_v53 }
  0x5c   :  { %v513_v47 = vmul.f32 %v850_v19, %v512_v60 }
  0x5e   :  { %v514_v4 = vadd.f32 %v850_v19, %v513_v47 }
  0x60   :  { %v516_v11 = vsel %vm515_vm7, %v850_v19, %v514_v4 }
  0xc2   :  { %v468_v46 = vpop.f32.mrf.mxu2  ;;  %v491_v52 = vpop.f32.mrf.mxu3 }
  0xc3   :  { %v469_v33 = vadd.f32 %v468_v46, %v444_v25  ;;  %v492_v45 = vadd.f32 %v491_v52, %v445_v35 }
  0xd6   :  { %v465_v56 = vpop.f32.mrf.mxu0  ;;  %v488_v58 = vpop.f32.mrf.mxu1 }
  0xd7   :  { %v466_v54 = vadd.f32 %v465_v56, %v444_v25  ;;  %v489_v59 = vadd.f32 %v488_v58, %v445_v35  ;;  %v494_v35 = vld [vmem:[%s1180_s3] sm:$0x3]  ;;  %s996_s3 = smov [#allocation11]  }
  0xd8   :  { %s631_s15 = sshll.u32 %s996_s3, 4  ;;  %s632_s15 = int_to_ptr.vmem [resolvable:$true] %s631_s15 }
  0xd9   :  { %v496_v61 = vadd.f32 %v469_v33, %v466_v54  ;;  %v503_v63 = vadd.f32 %v492_v45, %v489_v59 }
  0xdb   :  { %v497_v9 = vrot.slane %v496_v61, 4  ;;  %v504_v36 = vrot.slane %v503_v63, 4 }
  0xdd   :  { %v498_v0 = vadd.f32 %v497_v9, %v496_v61  ;;  %v505_v1 = vadd.f32 %v504_v36, %v503_v63 }
  0xdf   :  { %v499_v55 = vrot.slane %v498_v0, 2  ;;  %v506_v3 = vrot.slane %v505_v1, 2 }
  0xe1   :  { %v500_v5 = vadd.f32 %v499_v55, %v498_v0  ;;  %v507_v7 = vadd.f32 %v506_v3, %v505_v1 }
  0xe3   :  { %v501_v8 = vrot.slane %v500_v5, 1  ;;  %v508_v10 = vrot.slane %v507_v7, 1 }
  0xe5   :  { %v502_v12 = vadd.f32 %v501_v8, %v500_v5  ;;  %v509_v49 = vadd.f32 %v508_v10, %v507_v7 }
  0xe7   :  { %v517_v2 = vmul.f32 %v516_v11, %v502_v12  ;;  %v518_v13 = vmul.f32 %v516_v11, %v509_v49 }
  0xe9   :  { %v519_v14 = vsub.f32 %v466_v54, %v517_v2  ;;  %v521_v57 = vsub.f32 %v469_v33, %v517_v2  ;;  %v520_v6 = vsub.f32 %v489_v59, %v518_v13  ;;  %v522_v20 = vsub.f32 %v492_v45, %v518_v13  ;;  %v495_v33 = vld [vmem:[#allocation9] sm:$0x3] }
  0xea   :  { %v570_v45 = vperm.slane %v494_v35, 0  ;;  %v571_v54 = vperm.slane %v494_v35, 1  ;;  %v579_v61 = vperm.slane %v495_v33, 0  ;;  %v580_v47 = vperm.slane %v495_v33, 1 }
  0xeb   :  { %v523_v16 = vmul.f32 %v519_v14, %v519_v14  ;;  %v525_v17 = vmul.f32 %v521_v57, %v521_v57  ;;  %v524_v23 = vmul.f32 %v520_v6, %v520_v6  ;;  %v526_v26 = vmul.f32 %v522_v20, %v522_v20 }
  0xed   :  { %v527_v27 = vadd.f32 %v525_v17, %v523_v16  ;;  %v534_v28 = vadd.f32 %v526_v26, %v524_v23 }
  0xef   :  { %v528_v30 = vrot.slane %v527_v27, 4  ;;  %v535_v24 = vrot.slane %v534_v28, 4 }
  0xf1   :  { %v529_v31 = vadd.f32 %v528_v30, %v527_v27  ;;  %v536_v34 = vadd.f32 %v535_v24, %v534_v28 }
  0xf3   :  { %v530_v37 = vrot.slane %v529_v31, 2  ;;  %v537_v40 = vrot.slane %v536_v34, 2 }
  0xf5   :  { %v531_v38 = vadd.f32 %v530_v37, %v529_v31  ;;  %v538_v41 = vadd.f32 %v537_v40, %v536_v34 }
  0xf7   :  { %v532_v42 = vrot.slane %v531_v38, 1  ;;  %v539_v21 = vrot.slane %v538_v41, 1 }
  0xf9   :  { %v533_v32 = vadd.f32 %v532_v42, %v531_v38  ;;  %v540_v43 = vadd.f32 %v539_v21, %v538_v41 }
  0xfb   :  { %v541_v44 = vmul.f32 %v533_v32, %v516_v11  ;;  %v542_v48 = vmul.f32 %v540_v43, %v516_v11 }
  0xfd   :  { %v543_v29 = vadd.f32 1e-05, %v541_v44  ;;  %v544_v39 = vadd.f32 1e-05, %v542_v48 }
  0xff   :  { %851 = vrsqrt.f32 %v543_v29  ;;  %vm551_vm10 = vweird.f32 %v543_v29  ;;  %vm561_vm12 = vweird.f32 %v544_v39 }
 0x100   :  { %853 = vrsqrt.f32 %v544_v39 }
 0x105   :  { %v852_v50 = vpop.eup %851 }
 0x106   :  { %v854_v51 = vpop.eup %853  ;;  %v546_v62 = vmul.f32 %v852_v50, %v543_v29  ;;  %vm552_vm8 = vweird.f32 %v852_v50 }
 0x107   :  { %v556_v15 = vmul.f32 %v854_v51, %v544_v39  ;;  %vm562_vm9 = vweird.f32 %v854_v51  ;;  %vm553_vm11 = vmor %vm551_vm10, %vm552_vm8 }
 0x108   :  { %v547_v18 = vmul.f32 %v852_v50, %v546_v62  ;;  %vm563_vm13 = vmor %vm561_vm12, %vm562_vm9 }
 0x109   :  { %v557_v22 = vmul.f32 %v854_v51, %v556_v15 }
 0x10a   :  { %v548_v19 = vmul.f32 0.5, %v547_v18 }
 0x10b   :  { %v558_v25 = vmul.f32 0.5, %v557_v22 }
 0x10c   :  { %v549_v46 = vsub.f32 1.5, %v548_v19 }
 0x10d   :  { %v559_v52 = vsub.f32 1.5, %v558_v25 }
 0x10e   :  { %v550_v53 = vmul.f32 %v852_v50, %v549_v46 }
 0x10f   :  { %v560_v56 = vmul.f32 %v854_v51, %v559_v52 }
 0x110   :  { %v554_v58 = vsel %vm553_vm11, %v852_v50, %v550_v53 }
 0x111   :  { %v565_v59 = vmul.f32 %v554_v58, %v519_v14  ;;  %v564_v60 = vsel %vm563_vm13, %v854_v51, %v560_v56  ;;  %v567_v63 = vmul.f32 %v554_v58, %v521_v57 }
 0x112   :  { %v566_v9 = vmul.f32 %v564_v60, %v520_v6  ;;  %v568_v36 = vmul.f32 %v564_v60, %v522_v20 }
 0x113   :  { %v574_v0 = vmul.f32 %v570_v45, %v565_v59  ;;  %v576_v3 = vmul.f32 %v570_v45, %v567_v63 }
 0x114   :  { %v575_v1 = vmul.f32 %v571_v54, %v566_v9  ;;  %v577_v4 = vmul.f32 %v571_v54, %v568_v36 }
 0x115   :  { %v583_v55 = vadd.f32 %v579_v61, %v574_v0  ;;  %v585_v11 = vadd.f32 %v579_v61, %v576_v3 }
 0x116   :  { %v584_v5 = vadd.f32 %v580_v47, %v575_v1  ;;  %v586_v12 = vadd.f32 %v580_v47, %v577_v4 }
 0x117   :  { %v587_v7 = vmul.f32 %v583_v55, %v583_v55  ;;  %v589_v49 = vmul.f32 %v585_v11, %v585_v11 }
 0x118   :  { %v588_v8 = vmul.f32 %v584_v5, %v584_v5  ;;  %v590_v2 = vmul.f32 %v586_v12, %v586_v12 }
 0x11a   :  { %v591_v10 = vadd.f32 %v588_v8, %v587_v7  ;;  %v594_v13 = vadd.f32 %v590_v2, %v589_v49 }
 0x11c   :  { %592 = vadd.xlane.f32.xlu0 %v591_v10 }
 0x124   :  { %595 = vadd.xlane.f32.xlu0 %v594_v13 }
 0x18f   :  { %v593_v14 = vpop.xlane.xlu0 %592 }
 0x190   :  { %v597_v57 = vmax.f32 %v593_v14, 1e-24 }
 0x192   :  { %855 = vrsqrt.f32 %v597_v57  ;;  %vm605_vm15 = vweird.f32 %v597_v57 }
 0x197   :  { %v596_v6 = vpop.xlane.xlu0 %595 }
 0x198   :  { %v856_v20 = vpop.eup %855  ;;  %v598_v16 = vmax.f32 %v596_v6, 1e-24 }
 0x199   :  { %v600_v17 = vmul.f32 %v856_v20, %v597_v57  ;;  %vm606_vm14 = vweird.f32 %v856_v20 }
 0x19a   :  { %857 = vrsqrt.f32 %v598_v16  ;;  %vm607_vm0 = vmor %vm605_vm15, %vm606_vm14  ;;  %vm615_vm2 = vweird.f32 %v598_v16 }
 0x19b   :  { %v601_v23 = vmul.f32 %v856_v20, %v600_v17 }
 0x19d   :  { %v602_v26 = vmul.f32 0.5, %v601_v23 }
 0x19f   :  { %v603_v27 = vsub.f32 1.5, %v602_v26 }
 0x1a0   :  { %v858_v28 = vpop.eup %857 }
 0x1a1   :  { %v604_v30 = vmul.f32 %v856_v20, %v603_v27  ;;  %v610_v24 = vmul.f32 %v858_v28, %v598_v16  ;;  %vm616_vm1 = vweird.f32 %v858_v28 }
 0x1a2   :  { %vm617_vm3 = vmor %vm615_vm2, %vm616_vm1 }
 0x1a3   :  { %v608_v31 = vsel %vm607_vm0, %v856_v20, %v604_v30  ;;  %v611_v34 = vmul.f32 %v858_v28, %v610_v24 }
 0x1a4   :  { %v619_v37 = vmul.f32 %v608_v31, %v583_v55  ;;  %v620_v40 = vmul.f32 %v608_v31, %v584_v5 }
 0x1a5   :  { %v612_v38 = vmul.f32 0.5, %v611_v34 }
 0x1a6   :  { %623 = vst [vmem:[#allocation11] sm:$0xff] %v619_v37 }
 0x1a7   :  { %624 = vst [vmem:[#allocation11 + $0x8] sm:$0xff] %v620_v40  ;;  %v613_v41 = vsub.f32 1.5, %v612_v38 }
 0x1a9   :  { %v614_v42 = vmul.f32 %v858_v28, %v613_v41 }
 0x1ab   :  { %v618_v21 = vsel %vm617_vm3, %v858_v28, %v614_v42 }
 0x1ac   :  { %v621_v32 = vmul.f32 %v618_v21, %v585_v11  ;;  %v622_v43 = vmul.f32 %v618_v21, %v586_v12 }
 0x1ae   :  { %625 = vst [vmem:[#allocation11 + $0x10] sm:$0xff] %v621_v32 }
 0x1af   :  { %626 = vst [vmem:[#allocation11 + $0x18] sm:$0xff] %v622_v43 }
 0x1b0   :  { %639 = dma.vmem_to_hbm [thread:$0]  %s632_s15, 512, %s634_s18, [#allocation5], %s988_s26, %s988_s26, %s989_s27  }
 0x1b1   :  { %985 = dma.done.wait [#allocation5], 512  }
 0x1b2   :  { %986 = vsyncadd [#allocation5], 4294966784 }
 0x1b3   :  { %644 = vsyncpa [#allocation4], 1 }
 0x1b4   :  { %645 = vsyncpa [#allocation7], 1 }
 0x1b5   :  { %646 = vsyncpa [#allocation10], 1 }
 0x1b6   :  { %647 = vsyncpa [#allocation5], 1 }

</bundles_post_ra>
